<compile_context>
chip_gen: v6e
topology: v6e:2x2x1
jax: 0.10.0
libtpu: 0.0.40
codegen_flags: <defaults>
</compile_context>

<pallas_src>
import functools
import math

import jax
import jax.numpy as jnp
from jax.experimental import pallas as pl
from jax.experimental.pallas import tpu as pltpu

LN_EPS = 1e-5  # PyTorch nn.LayerNorm default


# --------------------------------------------------------------------------- helpers
def _layernorm(x, g, b):
    """f32 LayerNorm over the last axis; g, b are (1, D)."""
    mean = jnp.mean(x, axis=-1, keepdims=True)
    c = x - mean
    var = jnp.mean(c * c, axis=-1, keepdims=True)
    return c * jax.lax.rsqrt(var + LN_EPS) * g + b


def _pick_batch_tile(batch, seq):
    """Largest divisor of `batch` such that tile*seq ~>= 128 MXU rows, while keeping
    >= 2 grid steps when batch >= 2 (v7x has 2 TensorCores)."""
    cap = max(1, -(-128 // seq))
    best = 1
    for d in range(1, batch + 1):
        if batch % d != 0 or d > cap:
            continue
        if batch >= 2 and batch // d < 2:
            continue
        best = d
    return best


# ------------------------------------------------------------------ fully fused kernel
def _fused_forward_kernel(*refs, n_layers, n_heads, n_head_lin, n_head_norm,
                          head_norm):
    bf = jnp.bfloat16
    f32 = jnp.float32

    it = iter(refs)
    x_ref = next(it)
    emb_w_ref, emb_b_ref = next(it), next(it)
    layer_refs = [tuple(next(it) for _ in range(16)) for _ in range(n_layers)]
    head_lin_refs = [(next(it), next(it)) for _ in range(n_head_lin)]
    head_norm_refs = [(next(it), next(it)) for _ in range(n_head_norm)]
    out_ref = next(it)
    sum_ref = next(it)

    bt, seq, fin = x_ref.shape
    dmodel = emb_w_ref.shape[1]
    hd = dmodel // n_heads
    scale = 1.0 / math.sqrt(hd)

    # ---------------- input embedding (f32, tiny matmul) -----------------------------
    x2 = x_ref[...].reshape(bt * seq, fin)
    x = jnp.dot(x2, emb_w_ref[...], preferred_element_type=f32) + emb_b_ref[...]

    # ---------------- encoder layers (all weights VMEM resident) ---------------------
    for (wq, bq, wk, bk, wv, bv, woh, bo, l1g, l1b,
         wf1, bf1_, wf2, bf2_, l2g, l2b) in layer_refs:
        xb = x.astype(bf)
        q = jnp.dot(xb, wq[...], preferred_element_type=f32) + bq[...]
        k = jnp.dot(xb, wk[...], preferred_element_type=f32) + bk[...]
        v = jnp.dot(xb, wv[...], preferred_element_type=f32) + bv[...]
        q = q * scale

        wo_heads = woh[...]                                   # (H, hd, D) bf16
        attn_rows = []
        for b in range(bt):                                    # static; usually small
            r = slice(b * seq, (b + 1) * seq)
            qh = jnp.stack([q[r, h * hd:(h + 1) * hd] for h in range(n_heads)],
                           axis=0).astype(bf)                  # (H, S, hd)
            kh = jnp.stack([k[r, h * hd:(h + 1) * hd] for h in range(n_heads)],
                           axis=0).astype(bf)
            vh = jnp.stack([v[r, h * hd:(h + 1) * hd] for h in range(n_heads)],
                           axis=0).astype(bf)
            # batched (leading-batch) MXU ops over all heads at once
            s = jnp.einsum('hqd,hkd->hqk', qh, kh, preferred_element_type=f32)
            s = s - jnp.max(s, axis=-1, keepdims=True)
            p = jnp.exp(s)
            p = p * pl.reciprocal(jnp.sum(p, axis=-1, keepdims=True), approx=True)
            o = jnp.einsum('hqk,hkd->hqd', p.astype(bf), vh,
                           preferred_element_type=f32)         # (H, S, hd)
            # fold the out-projection per head; sum over heads replaces the lane concat
            ctx = jnp.einsum('hsd,hde->hse', o.astype(bf), wo_heads,
                             preferred_element_type=f32)       # (H, S, D)
            attn_rows.append(jnp.sum(ctx, axis=0))             # (S, D)
        attn = attn_rows[0] if bt == 1 else jnp.concatenate(attn_rows, axis=0)
        attn = attn + bo[...]

        # ---- add & norm 1 / feed-forward / add & norm 2 (batched over Bt*S rows) ----
        x1 = _layernorm(x + attn, l1g[...], l1b[...])
        hmid = jnp.maximum(
            jnp.dot(x1.astype(bf), wf1[...], preferred_element_type=f32) + bf1_[...],
            0.0)
        ff = jnp.dot(hmid.astype(bf), wf2[...], preferred_element_type=f32) + bf2_[...]
        x = _layernorm(x1 + ff, l2g[...], l2b[...])

    # ---------------- seq-sum over constituents + head MLP ---------------------------
    xsum = jnp.sum(x.reshape(bt, seq, dmodel), axis=1)          # (Bt, D)
    sum_ref[0] = xsum

    h = (jnp.dot(xsum.astype(bf), head_lin_refs[0][0][...],
                 preferred_element_type=f32) + head_lin_refs[0][1][...])
    if head_norm:
        h = _layernorm(h, head_norm_refs[0][0][...], head_norm_refs[0][1][...])
    for i in range(1, n_head_lin):
        if head_norm and (i - 1) < n_head_norm - 1:
            h = _layernorm(h, head_norm_refs[i][0][...], head_norm_refs[i][1][...])
        h = jnp.maximum(h, 0.0)
        h = (jnp.dot(h.astype(bf), head_lin_refs[i][0][...],
                     preferred_element_type=f32) + head_lin_refs[i][1][...])
    out_ref[0] = h


# ------------------------------------------------------------------------ model glue
def transformer_forward(x, params, *, n_heads, head_norm=True):
    """x: (batch, n_constit, input_dim) -> (head(x_sum) : (B, out_dim), x_sum : (B, D))."""
    B, S, Fin = x.shape
    D = params["emb_w"].shape[1]
    hd = D // n_heads
    Bt = _pick_batch_tile(B, S)
    n_tiles = B // Bt

    def const_spec(arr):
        nd = arr.ndim
        return pl.BlockSpec(arr.shape, lambda i: (0,) * nd)

    args, in_specs = [], []

    def add_const(arr):
        args.append(arr)
        in_specs.append(const_spec(arr))

    args.append(x)
    in_specs.append(pl.BlockSpec((Bt, S, Fin), lambda i: (i, 0, 0)))
    add_const(params["emb_w"])
    add_const(params["emb_b"].reshape(1, D))

    for lp in params["layers"]:
        wqkv, bqkv = lp["in_proj_w"], lp["in_proj_b"]
        # split the fused QKV projection at the wrapper (lane offset 0 for each matmul)
        add_const(wqkv[:, 0 * D:1 * D]); add_const(bqkv[0 * D:1 * D].reshape(1, D))
        add_const(wqkv[:, 1 * D:2 * D]); add_const(bqkv[1 * D:2 * D].reshape(1, D))
        add_const(wqkv[:, 2 * D:3 * D]); add_const(bqkv[2 * D:3 * D].reshape(1, D))
        add_const(lp["out_proj_w"].reshape(n_heads, hd, D))   # per-head W_o slices
        add_const(lp["out_proj_b"].reshape(1, D))
        add_const(lp["ln1_g"].reshape(1, D)); add_const(lp["ln1_b"].reshape(1, D))
        add_const(lp["ff1_w"]); add_const(lp["ff1_b"].reshape(1, -1))
        add_const(lp["ff2_w"]); add_const(lp["ff2_b"].reshape(1, D))
        add_const(lp["ln2_g"].reshape(1, D)); add_const(lp["ln2_b"].reshape(1, D))

    head_layers = params["head"]["layers"]
    head_norms = params["head"]["norms"] if head_norm else []
    for lyr in head_layers:
        add_const(lyr["w"])
        add_const(lyr["b"].reshape(1, -1))
    for nm in head_norms:
        add_const(nm["g"].reshape(1, -1))
        add_const(nm["b"].reshape(1, -1))

    out_dim = head_layers[-1]["w"].shape[1]
    out_shape = (jax.ShapeDtypeStruct((n_tiles, Bt, out_dim), jnp.float32),
                 jax.ShapeDtypeStruct((n_tiles, Bt, D), jnp.float32))
    out_specs = (pl.BlockSpec((1, Bt, out_dim), lambda i: (i, 0, 0)),
                 pl.BlockSpec((1, Bt, D), lambda i: (i, 0, 0)))

    # Right-sized VMEM reservation (v7x has only 64 MiB physical): footprint-derived,
    # clamped to [16, 32] MiB.
    in_bytes = sum(int(a.size) * a.dtype.itemsize for a in args)
    out_bytes = sum(math.prod(s.shape) * jnp.dtype(s.dtype).itemsize for s in out_shape)
    vmem_limit = int(min(max(2 * (in_bytes + out_bytes) + (8 << 20), 16 << 20),
                         32 << 20))

    kernel = functools.partial(
        _fused_forward_kernel,
        n_layers=len(params["layers"]), n_heads=n_heads,
        n_head_lin=len(head_layers), n_head_norm=len(head_norms),
        head_norm=head_norm)

    head_out, reps = pl.pallas_call(
        kernel,
        grid=(n_tiles,),
        in_specs=in_specs,
        out_specs=out_specs,
        out_shape=out_shape,
        compiler_params=pltpu.CompilerParams(
            dimension_semantics=("parallel",),
            vmem_limit_bytes=vmem_limit),
    )(*args)
    return head_out.reshape(B, out_dim), reps.reshape(B, D)   # matches (self.head(x), x)


# --------------------------------------------------------------------------- params
def init_params(key, *, input_dim, model_dim, ff_dim, n_layers, hidden_dim,
                n_hidden, output_dim):
    keys = iter(jax.random.split(key, 128))

    def lin(din, dout, dtype=jnp.bfloat16):
        w = (jax.random.normal(next(keys), (din, dout), jnp.float32)
             / math.sqrt(din)).astype(dtype)
        b = 0.01 * jax.random.normal(next(keys), (dout,), jnp.float32)
        return w, b

    params = {}
    # raw-feature embedding stays f32 (tiny matmul, preserves input precision)
    params["emb_w"], params["emb_b"] = lin(input_dim, model_dim, dtype=jnp.float32)

    layers = []
    for _ in range(n_layers):
        lp = {}
        lp["in_proj_w"], lp["in_proj_b"] = lin(model_dim, 3 * model_dim)
        lp["out_proj_w"], lp["out_proj_b"] = lin(model_dim, model_dim)
        lp["ff1_w"], lp["ff1_b"] = lin(model_dim, ff_dim)
        lp["ff2_w"], lp["ff2_b"] = lin(ff_dim, model_dim)
        lp["ln1_g"] = jnp.ones((model_dim,), jnp.float32)
        lp["ln1_b"] = jnp.zeros((model_dim,), jnp.float32)
        lp["ln2_g"] = jnp.ones((model_dim,), jnp.float32)
        lp["ln2_b"] = jnp.zeros((model_dim,), jnp.float32)
        layers.append(lp)
    params["layers"] = layers

    dims = [model_dim] + [hidden_dim] * (n_hidden + 1) + [output_dim]
    head_layers = []
    for din, dout in zip(dims[:-1], dims[1:]):
        w, b = lin(din, dout)
        head_layers.append({"w": w, "b": b})
    norms = [{"g": jnp.ones((hidden_dim,), jnp.float32),
              "b": jnp.zeros((hidden_dim,), jnp.float32)}
             for _ in range(n_hidden + 1)]
    params["head"] = {"layers": head_layers, "norms": norms}
    return params


# ------------------------------------------------------------------------------ main
if __name__ == "__main__":
    # small, module-consistent shapes
    B, S = 2, 8                     # batch, n_constit
    input_dim, model_dim = 7, 32
    n_heads, dim_feedforward, n_layers = 4, 64, 2
    hidden_head_dim, n_head_hidden, output_dim = 64, 2, 8

    key = jax.random.PRNGKey(0)
    kx, kp = jax.random.split(key)
    x = jax.random.normal(kx, (B, S, input_dim), jnp.float32)
    params = init_params(kp, input_dim=input_dim, model_dim=model_dim,
                         ff_dim=dim_feedforward, n_layers=n_layers,
                         hidden_dim=hidden_head_dim, n_hidden=n_head_hidden,
                         output_dim=output_dim)

    fwd = jax.jit(functools.partial(transformer_forward,
                                    n_heads=n_heads, head_norm=True))
    out, reps = fwd(x, params)
    jax.block_until_ready((out, reps))

    assert out.shape == (B, output_dim), out.shape
    assert reps.shape == (B, model_dim), reps.shape
    assert bool(jnp.all(jnp.isfinite(out))) and bool(jnp.all(jnp.isfinite(reps)))
    print("KERNEL_OK")
</pallas_src>

<mosaic_0001>
module attributes {stable_mosaic.version = 11 : i64} {
  func.func @_fused_forward_kernel(%arg0: i32, %arg1: memref<1x8x7xf32, #tpu.memory_space<vmem>>, %arg2: memref<7x32xf32, #tpu.memory_space<vmem>>, %arg3: memref<1x32xf32, #tpu.memory_space<vmem>>, %arg4: memref<32x32xbf16, #tpu.memory_space<vmem>>, %arg5: memref<1x32xf32, #tpu.memory_space<vmem>>, %arg6: memref<32x32xbf16, #tpu.memory_space<vmem>>, %arg7: memref<1x32xf32, #tpu.memory_space<vmem>>, %arg8: memref<32x32xbf16, #tpu.memory_space<vmem>>, %arg9: memref<1x32xf32, #tpu.memory_space<vmem>>, %arg10: memref<4x8x32xbf16, #tpu.memory_space<vmem>>, %arg11: memref<1x32xf32, #tpu.memory_space<vmem>>, %arg12: memref<1x32xf32, #tpu.memory_space<vmem>>, %arg13: memref<1x32xf32, #tpu.memory_space<vmem>>, %arg14: memref<32x64xbf16, #tpu.memory_space<vmem>>, %arg15: memref<1x64xf32, #tpu.memory_space<vmem>>, %arg16: memref<64x32xbf16, #tpu.memory_space<vmem>>, %arg17: memref<1x32xf32, #tpu.memory_space<vmem>>, %arg18: memref<1x32xf32, #tpu.memory_space<vmem>>, %arg19: memref<1x32xf32, #tpu.memory_space<vmem>>, %arg20: memref<32x32xbf16, #tpu.memory_space<vmem>>, %arg21: memref<1x32xf32, #tpu.memory_space<vmem>>, %arg22: memref<32x32xbf16, #tpu.memory_space<vmem>>, %arg23: memref<1x32xf32, #tpu.memory_space<vmem>>, %arg24: memref<32x32xbf16, #tpu.memory_space<vmem>>, %arg25: memref<1x32xf32, #tpu.memory_space<vmem>>, %arg26: memref<4x8x32xbf16, #tpu.memory_space<vmem>>, %arg27: memref<1x32xf32, #tpu.memory_space<vmem>>, %arg28: memref<1x32xf32, #tpu.memory_space<vmem>>, %arg29: memref<1x32xf32, #tpu.memory_space<vmem>>, %arg30: memref<32x64xbf16, #tpu.memory_space<vmem>>, %arg31: memref<1x64xf32, #tpu.memory_space<vmem>>, %arg32: memref<64x32xbf16, #tpu.memory_space<vmem>>, %arg33: memref<1x32xf32, #tpu.memory_space<vmem>>, %arg34: memref<1x32xf32, #tpu.memory_space<vmem>>, %arg35: memref<1x32xf32, #tpu.memory_space<vmem>>, %arg36: memref<32x64xbf16, #tpu.memory_space<vmem>>, %arg37: memref<1x64xf32, #tpu.memory_space<vmem>>, %arg38: memref<64x64xbf16, #tpu.memory_space<vmem>>, %arg39: memref<1x64xf32, #tpu.memory_space<vmem>>, %arg40: memref<64x64xbf16, #tpu.memory_space<vmem>>, %arg41: memref<1x64xf32, #tpu.memory_space<vmem>>, %arg42: memref<64x8xbf16, #tpu.memory_space<vmem>>, %arg43: memref<1x8xf32, #tpu.memory_space<vmem>>, %arg44: memref<1x64xf32, #tpu.memory_space<vmem>>, %arg45: memref<1x64xf32, #tpu.memory_space<vmem>>, %arg46: memref<1x64xf32, #tpu.memory_space<vmem>>, %arg47: memref<1x64xf32, #tpu.memory_space<vmem>>, %arg48: memref<1x64xf32, #tpu.memory_space<vmem>>, %arg49: memref<1x64xf32, #tpu.memory_space<vmem>>, %arg50: memref<1x1x8xf32, #tpu.memory_space<vmem>>, %arg51: memref<1x1x32xf32, #tpu.memory_space<vmem>>) attributes {dimension_semantics = [#tpu.dimension_semantics<parallel>], iteration_bounds = array<i64: 2>, scalar_prefetch = 0 : i64, scratch_operands = 0 : i64, tpu.core_type = #tpu.core_type<tc>, window_params = [{transform_indices = @transform_0, window_bounds = array<i64: 1, 8, 7>}, {pipeline_mode = #tpu.pipeline_mode<synchronous>, transform_indices = @transform_1, window_bounds = array<i64: 7, 32>}, {pipeline_mode = #tpu.pipeline_mode<synchronous>, transform_indices = @transform_2, window_bounds = array<i64: 1, 32>}, {pipeline_mode = #tpu.pipeline_mode<synchronous>, transform_indices = @transform_3, window_bounds = array<i64: 32, 32>}, {pipeline_mode = #tpu.pipeline_mode<synchronous>, transform_indices = @transform_4, window_bounds = array<i64: 1, 32>}, {pipeline_mode = #tpu.pipeline_mode<synchronous>, transform_indices = @transform_5, window_bounds = array<i64: 32, 32>}, {pipeline_mode = #tpu.pipeline_mode<synchronous>, transform_indices = @transform_6, window_bounds = array<i64: 1, 32>}, {pipeline_mode = #tpu.pipeline_mode<synchronous>, transform_indices = @transform_7, window_bounds = array<i64: 32, 32>}, {pipeline_mode = #tpu.pipeline_mode<synchronous>, transform_indices = @transform_8, window_bounds = array<i64: 1, 32>}, {pipeline_mode = #tpu.pipeline_mode<synchronous>, transform_indices = @transform_9, window_bounds = array<i64: 4, 8, 32>}, {pipeline_mode = #tpu.pipeline_mode<synchronous>, transform_indices = @transform_10, window_bounds = array<i64: 1, 32>}, {pipeline_mode = #tpu.pipeline_mode<synchronous>, transform_indices = @transform_11, window_bounds = array<i64: 1, 32>}, {pipeline_mode = #tpu.pipeline_mode<synchronous>, transform_indices = @transform_12, window_bounds = array<i64: 1, 32>}, {pipeline_mode = #tpu.pipeline_mode<synchronous>, transform_indices = @transform_13, window_bounds = array<i64: 32, 64>}, {pipeline_mode = #tpu.pipeline_mode<synchronous>, transform_indices = @transform_14, window_bounds = array<i64: 1, 64>}, {pipeline_mode = #tpu.pipeline_mode<synchronous>, transform_indices = @transform_15, window_bounds = array<i64: 64, 32>}, {pipeline_mode = #tpu.pipeline_mode<synchronous>, transform_indices = @transform_16, window_bounds = array<i64: 1, 32>}, {pipeline_mode = #tpu.pipeline_mode<synchronous>, transform_indices = @transform_17, window_bounds = array<i64: 1, 32>}, {pipeline_mode = #tpu.pipeline_mode<synchronous>, transform_indices = @transform_18, window_bounds = array<i64: 1, 32>}, {pipeline_mode = #tpu.pipeline_mode<synchronous>, transform_indices = @transform_19, window_bounds = array<i64: 32, 32>}, {pipeline_mode = #tpu.pipeline_mode<synchronous>, transform_indices = @transform_20, window_bounds = array<i64: 1, 32>}, {pipeline_mode = #tpu.pipeline_mode<synchronous>, transform_indices = @transform_21, window_bounds = array<i64: 32, 32>}, {pipeline_mode = #tpu.pipeline_mode<synchronous>, transform_indices = @transform_22, window_bounds = array<i64: 1, 32>}, {pipeline_mode = #tpu.pipeline_mode<synchronous>, transform_indices = @transform_23, window_bounds = array<i64: 32, 32>}, {pipeline_mode = #tpu.pipeline_mode<synchronous>, transform_indices = @transform_24, window_bounds = array<i64: 1, 32>}, {pipeline_mode = #tpu.pipeline_mode<synchronous>, transform_indices = @transform_25, window_bounds = array<i64: 4, 8, 32>}, {pipeline_mode = #tpu.pipeline_mode<synchronous>, transform_indices = @transform_26, window_bounds = array<i64: 1, 32>}, {pipeline_mode = #tpu.pipeline_mode<synchronous>, transform_indices = @transform_27, window_bounds = array<i64: 1, 32>}, {pipeline_mode = #tpu.pipeline_mode<synchronous>, transform_indices = @transform_28, window_bounds = array<i64: 1, 32>}, {pipeline_mode = #tpu.pipeline_mode<synchronous>, transform_indices = @transform_29, window_bounds = array<i64: 32, 64>}, {pipeline_mode = #tpu.pipeline_mode<synchronous>, transform_indices = @transform_30, window_bounds = array<i64: 1, 64>}, {pipeline_mode = #tpu.pipeline_mode<synchronous>, transform_indices = @transform_31, window_bounds = array<i64: 64, 32>}, {pipeline_mode = #tpu.pipeline_mode<synchronous>, transform_indices = @transform_32, window_bounds = array<i64: 1, 32>}, {pipeline_mode = #tpu.pipeline_mode<synchronous>, transform_indices = @transform_33, window_bounds = array<i64: 1, 32>}, {pipeline_mode = #tpu.pipeline_mode<synchronous>, transform_indices = @transform_34, window_bounds = array<i64: 1, 32>}, {pipeline_mode = #tpu.pipeline_mode<synchronous>, transform_indices = @transform_35, window_bounds = array<i64: 32, 64>}, {pipeline_mode = #tpu.pipeline_mode<synchronous>, transform_indices = @transform_36, window_bounds = array<i64: 1, 64>}, {pipeline_mode = #tpu.pipeline_mode<synchronous>, transform_indices = @transform_37, window_bounds = array<i64: 64, 64>}, {pipeline_mode = #tpu.pipeline_mode<synchronous>, transform_indices = @transform_38, window_bounds = array<i64: 1, 64>}, {pipeline_mode = #tpu.pipeline_mode<synchronous>, transform_indices = @transform_39, window_bounds = array<i64: 64, 64>}, {pipeline_mode = #tpu.pipeline_mode<synchronous>, transform_indices = @transform_40, window_bounds = array<i64: 1, 64>}, {pipeline_mode = #tpu.pipeline_mode<synchronous>, transform_indices = @transform_41, window_bounds = array<i64: 64, 8>}, {pipeline_mode = #tpu.pipeline_mode<synchronous>, transform_indices = @transform_42, window_bounds = array<i64: 1, 8>}, {pipeline_mode = #tpu.pipeline_mode<synchronous>, transform_indices = @transform_43, window_bounds = array<i64: 1, 64>}, {pipeline_mode = #tpu.pipeline_mode<synchronous>, transform_indices = @transform_44, window_bounds = array<i64: 1, 64>}, {pipeline_mode = #tpu.pipeline_mode<synchronous>, transform_indices = @transform_45, window_bounds = array<i64: 1, 64>}, {pipeline_mode = #tpu.pipeline_mode<synchronous>, transform_indices = @transform_46, window_bounds = array<i64: 1, 64>}, {pipeline_mode = #tpu.pipeline_mode<synchronous>, transform_indices = @transform_47, window_bounds = array<i64: 1, 64>}, {pipeline_mode = #tpu.pipeline_mode<synchronous>, transform_indices = @transform_48, window_bounds = array<i64: 1, 64>}, {transform_indices = @transform_49, window_bounds = array<i64: 1, 1, 8>}, {transform_indices = @transform_50, window_bounds = array<i64: 1, 1, 32>}]} {
    %c0 = arith.constant 0 : index
    %c0_0 = arith.constant 0 : index
    %c0_1 = arith.constant 0 : index
    %0 = vector.load %arg1[%c0, %c0_0, %c0_1] : memref<1x8x7xf32, #tpu.memory_space<vmem>>, vector<1x8x7xf32>
    %1 = vector.shape_cast %0 : vector<1x8x7xf32> to vector<8x7xf32>
    %c0_2 = arith.constant 0 : index
    %c0_3 = arith.constant 0 : index
    %2 = vector.load %arg2[%c0_2, %c0_3] : memref<7x32xf32, #tpu.memory_space<vmem>>, vector<7x32xf32>
    %cst = arith.constant dense<0.000000e+00> : vector<8x32xf32>
    %3 = tpu.matmul %1, %2, %cst {dimension_numbers = #tpu.dot_dimension_numbers<[1], [0], [0], [1], [0, 0, 1, 1], [], []>} : vector<8x7xf32>, vector<7x32xf32>, vector<8x32xf32> -> vector<8x32xf32>
    %c0_4 = arith.constant 0 : index
    %c0_5 = arith.constant 0 : index
    %4 = vector.load %arg3[%c0_4, %c0_5] : memref<1x32xf32, #tpu.memory_space<vmem>>, vector<1x32xf32>
    %5 = vector.broadcast %4 : vector<1x32xf32> to vector<8x32xf32>
    %6 = arith.addf %3, %5 : vector<8x32xf32>
    %7 = arith.truncf %6 : vector<8x32xf32> to vector<8x32xbf16>
    %c0_6 = arith.constant 0 : index
    %c0_7 = arith.constant 0 : index
    %8 = vector.load %arg4[%c0_6, %c0_7] : memref<32x32xbf16, #tpu.memory_space<vmem>>, vector<32x32xbf16>
    %cst_8 = arith.constant dense<0.000000e+00> : vector<8x32xf32>
    %9 = tpu.matmul %7, %8, %cst_8 {dimension_numbers = #tpu.dot_dimension_numbers<[1], [0], [0], [1], [0, 0, 1, 1], [], []>} : vector<8x32xbf16>, vector<32x32xbf16>, vector<8x32xf32> -> vector<8x32xf32>
    %c0_9 = arith.constant 0 : index
    %c0_10 = arith.constant 0 : index
    %10 = vector.load %arg5[%c0_9, %c0_10] : memref<1x32xf32, #tpu.memory_space<vmem>>, vector<1x32xf32>
    %11 = vector.broadcast %10 : vector<1x32xf32> to vector<8x32xf32>
    %12 = arith.addf %9, %11 : vector<8x32xf32>
    %c0_11 = arith.constant 0 : index
    %c0_12 = arith.constant 0 : index
    %13 = vector.load %arg6[%c0_11, %c0_12] : memref<32x32xbf16, #tpu.memory_space<vmem>>, vector<32x32xbf16>
    %cst_13 = arith.constant dense<0.000000e+00> : vector<8x32xf32>
    %14 = tpu.matmul %7, %13, %cst_13 {dimension_numbers = #tpu.dot_dimension_numbers<[1], [0], [0], [1], [0, 0, 1, 1], [], []>} : vector<8x32xbf16>, vector<32x32xbf16>, vector<8x32xf32> -> vector<8x32xf32>
    %c0_14 = arith.constant 0 : index
    %c0_15 = arith.constant 0 : index
    %15 = vector.load %arg7[%c0_14, %c0_15] : memref<1x32xf32, #tpu.memory_space<vmem>>, vector<1x32xf32>
    %16 = vector.broadcast %15 : vector<1x32xf32> to vector<8x32xf32>
    %17 = arith.addf %14, %16 : vector<8x32xf32>
    %c0_16 = arith.constant 0 : index
    %c0_17 = arith.constant 0 : index
    %18 = vector.load %arg8[%c0_16, %c0_17] : memref<32x32xbf16, #tpu.memory_space<vmem>>, vector<32x32xbf16>
    %cst_18 = arith.constant dense<0.000000e+00> : vector<8x32xf32>
    %19 = tpu.matmul %7, %18, %cst_18 {dimension_numbers = #tpu.dot_dimension_numbers<[1], [0], [0], [1], [0, 0, 1, 1], [], []>} : vector<8x32xbf16>, vector<32x32xbf16>, vector<8x32xf32> -> vector<8x32xf32>
    %c0_19 = arith.constant 0 : index
    %c0_20 = arith.constant 0 : index
    %20 = vector.load %arg9[%c0_19, %c0_20] : memref<1x32xf32, #tpu.memory_space<vmem>>, vector<1x32xf32>
    %21 = vector.broadcast %20 : vector<1x32xf32> to vector<8x32xf32>
    %22 = arith.addf %19, %21 : vector<8x32xf32>
    %cst_21 = arith.constant 0.353553385 : f32
    %23 = vector.broadcast %cst_21 : f32 to vector<8x32xf32>
    %24 = arith.mulf %12, %23 : vector<8x32xf32>
    %c0_22 = arith.constant 0 : index
    %c0_23 = arith.constant 0 : index
    %c0_24 = arith.constant 0 : index
    %25 = vector.load %arg10[%c0_22, %c0_23, %c0_24] : memref<4x8x32xbf16, #tpu.memory_space<vmem>>, vector<4x8x32xbf16>
    %26 = vector.extract_strided_slice %24 {offsets = [0, 0], sizes = [8, 8], strides = [1, 1]} : vector<8x32xf32> to vector<8x8xf32>
    %27 = vector.extract_strided_slice %24 {offsets = [0, 8], sizes = [8, 8], strides = [1, 1]} : vector<8x32xf32> to vector<8x8xf32>
    %28 = vector.extract_strided_slice %24 {offsets = [0, 16], sizes = [8, 8], strides = [1, 1]} : vector<8x32xf32> to vector<8x8xf32>
    %29 = vector.extract_strided_slice %24 {offsets = [0, 24], sizes = [8, 8], strides = [1, 1]} : vector<8x32xf32> to vector<8x8xf32>
    %30 = vector.shape_cast %26 : vector<8x8xf32> to vector<1x8x8xf32>
    %31 = vector.shape_cast %27 : vector<8x8xf32> to vector<1x8x8xf32>
    %32 = vector.shape_cast %28 : vector<8x8xf32> to vector<1x8x8xf32>
    %33 = vector.shape_cast %29 : vector<8x8xf32> to vector<1x8x8xf32>
    %34 = tpu.concatenate %30, %31, %32, %33 in 0 : vector<1x8x8xf32>, vector<1x8x8xf32>, vector<1x8x8xf32>, vector<1x8x8xf32> -> vector<4x8x8xf32>
    %35 = arith.truncf %34 : vector<4x8x8xf32> to vector<4x8x8xbf16>
    %36 = vector.extract_strided_slice %17 {offsets = [0, 0], sizes = [8, 8], strides = [1, 1]} : vector<8x32xf32> to vector<8x8xf32>
    %37 = vector.extract_strided_slice %17 {offsets = [0, 8], sizes = [8, 8], strides = [1, 1]} : vector<8x32xf32> to vector<8x8xf32>
    %38 = vector.extract_strided_slice %17 {offsets = [0, 16], sizes = [8, 8], strides = [1, 1]} : vector<8x32xf32> to vector<8x8xf32>
    %39 = vector.extract_strided_slice %17 {offsets = [0, 24], sizes = [8, 8], strides = [1, 1]} : vector<8x32xf32> to vector<8x8xf32>
    %40 = vector.shape_cast %36 : vector<8x8xf32> to vector<1x8x8xf32>
    %41 = vector.shape_cast %37 : vector<8x8xf32> to vector<1x8x8xf32>
    %42 = vector.shape_cast %38 : vector<8x8xf32> to vector<1x8x8xf32>
    %43 = vector.shape_cast %39 : vector<8x8xf32> to vector<1x8x8xf32>
    %44 = tpu.concatenate %40, %41, %42, %43 in 0 : vector<1x8x8xf32>, vector<1x8x8xf32>, vector<1x8x8xf32>, vector<1x8x8xf32> -> vector<4x8x8xf32>
    %45 = arith.truncf %44 : vector<4x8x8xf32> to vector<4x8x8xbf16>
    %46 = vector.extract_strided_slice %22 {offsets = [0, 0], sizes = [8, 8], strides = [1, 1]} : vector<8x32xf32> to vector<8x8xf32>
    %47 = vector.extract_strided_slice %22 {offsets = [0, 8], sizes = [8, 8], strides = [1, 1]} : vector<8x32xf32> to vector<8x8xf32>
    %48 = vector.extract_strided_slice %22 {offsets = [0, 16], sizes = [8, 8], strides = [1, 1]} : vector<8x32xf32> to vector<8x8xf32>
    %49 = vector.extract_strided_slice %22 {offsets = [0, 24], sizes = [8, 8], strides = [1, 1]} : vector<8x32xf32> to vector<8x8xf32>
    %50 = vector.shape_cast %46 : vector<8x8xf32> to vector<1x8x8xf32>
    %51 = vector.shape_cast %47 : vector<8x8xf32> to vector<1x8x8xf32>
    %52 = vector.shape_cast %48 : vector<8x8xf32> to vector<1x8x8xf32>
    %53 = vector.shape_cast %49 : vector<8x8xf32> to vector<1x8x8xf32>
    %54 = tpu.concatenate %50, %51, %52, %53 in 0 : vector<1x8x8xf32>, vector<1x8x8xf32>, vector<1x8x8xf32>, vector<1x8x8xf32> -> vector<4x8x8xf32>
    %55 = arith.truncf %54 : vector<4x8x8xf32> to vector<4x8x8xbf16>
    "tpu.trace_start"() <{level = 10 : i32, message = "hqd,hkd->hqk"}> : () -> ()
    %cst_25 = arith.constant dense<0.000000e+00> : vector<4x8x8xf32>
    %56 = tpu.matmul %35, %45, %cst_25 {dimension_numbers = #tpu.dot_dimension_numbers<[2], [2], [1], [1], [0, 0, 0, 1, 1, 1], [0], [0]>} : vector<4x8x8xbf16>, vector<4x8x8xbf16>, vector<4x8x8xf32> -> vector<4x8x8xf32>
    "tpu.trace_stop"() : () -> ()
    %cst_26 = arith.constant dense<0xFF800000> : vector<4x8xf32>
    %57 = vector.multi_reduction <maximumf>, %56, %cst_26 [2] : vector<4x8x8xf32> to vector<4x8xf32>
    %58 = vector.shape_cast %57 : vector<4x8xf32> to vector<4x8x1xf32>
    %59 = vector.broadcast %58 : vector<4x8x1xf32> to vector<4x8x8xf32>
    %60 = arith.subf %56, %59 : vector<4x8x8xf32>
    %61 = math.exp %60 : vector<4x8x8xf32>
    %cst_27 = arith.constant dense<0.000000e+00> : vector<4x8xf32>
    %62 = vector.multi_reduction <add>, %61, %cst_27 [2] : vector<4x8x8xf32> to vector<4x8xf32>
    %63 = vector.shape_cast %62 : vector<4x8xf32> to vector<4x8x1xf32>
    %64 = tpu.reciprocal %63 {approx = true} : vector<4x8x1xf32> -> vector<4x8x1xf32>
    %65 = vector.broadcast %64 : vector<4x8x1xf32> to vector<4x8x8xf32>
    %66 = arith.mulf %61, %65 : vector<4x8x8xf32>
    %67 = arith.truncf %66 : vector<4x8x8xf32> to vector<4x8x8xbf16>
    "tpu.trace_start"() <{level = 10 : i32, message = "hqk,hkd->hqd"}> : () -> ()
    %cst_28 = arith.constant dense<0.000000e+00> : vector<4x8x8xf32>
    %68 = tpu.matmul %67, %55, %cst_28 {dimension_numbers = #tpu.dot_dimension_numbers<[2], [1], [1], [2], [0, 0, 0, 1, 1, 2], [0], [0]>} : vector<4x8x8xbf16>, vector<4x8x8xbf16>, vector<4x8x8xf32> -> vector<4x8x8xf32>
    "tpu.trace_stop"() : () -> ()
    %69 = arith.truncf %68 : vector<4x8x8xf32> to vector<4x8x8xbf16>
    "tpu.trace_start"() <{level = 10 : i32, message = "hsd,hde->hse"}> : () -> ()
    %cst_29 = arith.constant dense<0.000000e+00> : vector<4x8x32xf32>
    %70 = tpu.matmul %69, %25, %cst_29 {dimension_numbers = #tpu.dot_dimension_numbers<[2], [1], [1], [2], [0, 0, 0, 1, 1, 2], [0], [0]>} : vector<4x8x8xbf16>, vector<4x8x32xbf16>, vector<4x8x32xf32> -> vector<4x8x32xf32>
    "tpu.trace_stop"() : () -> ()
    %cst_30 = arith.constant dense<0.000000e+00> : vector<8x32xf32>
    %71 = vector.multi_reduction <add>, %70, %cst_30 [0] : vector<4x8x32xf32> to vector<8x32xf32>
    %c0_31 = arith.constant 0 : index
    %c0_32 = arith.constant 0 : index
    %72 = vector.load %arg11[%c0_31, %c0_32] : memref<1x32xf32, #tpu.memory_space<vmem>>, vector<1x32xf32>
    %73 = vector.broadcast %72 : vector<1x32xf32> to vector<8x32xf32>
    %74 = arith.addf %71, %73 : vector<8x32xf32>
    %75 = arith.addf %6, %74 : vector<8x32xf32>
    %c0_33 = arith.constant 0 : index
    %c0_34 = arith.constant 0 : index
    %76 = vector.load %arg12[%c0_33, %c0_34] : memref<1x32xf32, #tpu.memory_space<vmem>>, vector<1x32xf32>
    %c0_35 = arith.constant 0 : index
    %c0_36 = arith.constant 0 : index
    %77 = vector.load %arg13[%c0_35, %c0_36] : memref<1x32xf32, #tpu.memory_space<vmem>>, vector<1x32xf32>
    %cst_37 = arith.constant dense<0.000000e+00> : vector<8xf32>
    %78 = vector.multi_reduction <add>, %75, %cst_37 [1] : vector<8x32xf32> to vector<8xf32>
    %79 = vector.shape_cast %78 : vector<8xf32> to vector<8x1xf32>
    %cst_38 = arith.constant 3.200000e+01 : f32
    %80 = vector.broadcast %cst_38 : f32 to vector<8x1xf32>
    %81 = arith.divf %79, %80 : vector<8x1xf32>
    %82 = vector.broadcast %81 : vector<8x1xf32> to vector<8x32xf32>
    %83 = arith.subf %75, %82 : vector<8x32xf32>
    %84 = arith.mulf %83, %83 : vector<8x32xf32>
    %cst_39 = arith.constant dense<0.000000e+00> : vector<8xf32>
    %85 = vector.multi_reduction <add>, %84, %cst_39 [1] : vector<8x32xf32> to vector<8xf32>
    %86 = vector.shape_cast %85 : vector<8xf32> to vector<8x1xf32>
    %cst_40 = arith.constant 3.200000e+01 : f32
    %87 = vector.broadcast %cst_40 : f32 to vector<8x1xf32>
    %88 = arith.divf %86, %87 : vector<8x1xf32>
    %cst_41 = arith.constant 9.99999974E-6 : f32
    %89 = vector.broadcast %cst_41 : f32 to vector<8x1xf32>
    %90 = arith.addf %88, %89 : vector<8x1xf32>
    %91 = math.rsqrt %90 : vector<8x1xf32>
    %92 = vector.broadcast %91 : vector<8x1xf32> to vector<8x32xf32>
    %93 = arith.mulf %83, %92 : vector<8x32xf32>
    %94 = vector.broadcast %76 : vector<1x32xf32> to vector<8x32xf32>
    %95 = arith.mulf %93, %94 : vector<8x32xf32>
    %96 = vector.broadcast %77 : vector<1x32xf32> to vector<8x32xf32>
    %97 = arith.addf %95, %96 : vector<8x32xf32>
    %98 = arith.truncf %97 : vector<8x32xf32> to vector<8x32xbf16>
    %c0_42 = arith.constant 0 : index
    %c0_43 = arith.constant 0 : index
    %99 = vector.load %arg14[%c0_42, %c0_43] : memref<32x64xbf16, #tpu.memory_space<vmem>>, vector<32x64xbf16>
    %cst_44 = arith.constant dense<0.000000e+00> : vector<8x64xf32>
    %100 = tpu.matmul %98, %99, %cst_44 {dimension_numbers = #tpu.dot_dimension_numbers<[1], [0], [0], [1], [0, 0, 1, 1], [], []>} : vector<8x32xbf16>, vector<32x64xbf16>, vector<8x64xf32> -> vector<8x64xf32>
    %c0_45 = arith.constant 0 : index
    %c0_46 = arith.constant 0 : index
    %101 = vector.load %arg15[%c0_45, %c0_46] : memref<1x64xf32, #tpu.memory_space<vmem>>, vector<1x64xf32>
    %102 = vector.broadcast %101 : vector<1x64xf32> to vector<8x64xf32>
    %103 = arith.addf %100, %102 : vector<8x64xf32>
    %cst_47 = arith.constant 0.000000e+00 : f32
    %104 = vector.broadcast %cst_47 : f32 to vector<8x64xf32>
    %105 = arith.maximumf %103, %104 : vector<8x64xf32>
    %106 = arith.truncf %105 : vector<8x64xf32> to vector<8x64xbf16>
    %c0_48 = arith.constant 0 : index
    %c0_49 = arith.constant 0 : index
    %107 = vector.load %arg16[%c0_48, %c0_49] : memref<64x32xbf16, #tpu.memory_space<vmem>>, vector<64x32xbf16>
    %cst_50 = arith.constant dense<0.000000e+00> : vector<8x32xf32>
    %108 = tpu.matmul %106, %107, %cst_50 {dimension_numbers = #tpu.dot_dimension_numbers<[1], [0], [0], [1], [0, 0, 1, 1], [], []>} : vector<8x64xbf16>, vector<64x32xbf16>, vector<8x32xf32> -> vector<8x32xf32>
    %c0_51 = arith.constant 0 : index
    %c0_52 = arith.constant 0 : index
    %109 = vector.load %arg17[%c0_51, %c0_52] : memref<1x32xf32, #tpu.memory_space<vmem>>, vector<1x32xf32>
    %110 = vector.broadcast %109 : vector<1x32xf32> to vector<8x32xf32>
    %111 = arith.addf %108, %110 : vector<8x32xf32>
    %112 = arith.addf %97, %111 : vector<8x32xf32>
    %c0_53 = arith.constant 0 : index
    %c0_54 = arith.constant 0 : index
    %113 = vector.load %arg18[%c0_53, %c0_54] : memref<1x32xf32, #tpu.memory_space<vmem>>, vector<1x32xf32>
    %c0_55 = arith.constant 0 : index
    %c0_56 = arith.constant 0 : index
    %114 = vector.load %arg19[%c0_55, %c0_56] : memref<1x32xf32, #tpu.memory_space<vmem>>, vector<1x32xf32>
    %cst_57 = arith.constant dense<0.000000e+00> : vector<8xf32>
    %115 = vector.multi_reduction <add>, %112, %cst_57 [1] : vector<8x32xf32> to vector<8xf32>
    %116 = vector.shape_cast %115 : vector<8xf32> to vector<8x1xf32>
    %cst_58 = arith.constant 3.200000e+01 : f32
    %117 = vector.broadcast %cst_58 : f32 to vector<8x1xf32>
    %118 = arith.divf %116, %117 : vector<8x1xf32>
    %119 = vector.broadcast %118 : vector<8x1xf32> to vector<8x32xf32>
    %120 = arith.subf %112, %119 : vector<8x32xf32>
    %121 = arith.mulf %120, %120 : vector<8x32xf32>
    %cst_59 = arith.constant dense<0.000000e+00> : vector<8xf32>
    %122 = vector.multi_reduction <add>, %121, %cst_59 [1] : vector<8x32xf32> to vector<8xf32>
    %123 = vector.shape_cast %122 : vector<8xf32> to vector<8x1xf32>
    %cst_60 = arith.constant 3.200000e+01 : f32
    %124 = vector.broadcast %cst_60 : f32 to vector<8x1xf32>
    %125 = arith.divf %123, %124 : vector<8x1xf32>
    %cst_61 = arith.constant 9.99999974E-6 : f32
    %126 = vector.broadcast %cst_61 : f32 to vector<8x1xf32>
    %127 = arith.addf %125, %126 : vector<8x1xf32>
    %128 = math.rsqrt %127 : vector<8x1xf32>
    %129 = vector.broadcast %128 : vector<8x1xf32> to vector<8x32xf32>
    %130 = arith.mulf %120, %129 : vector<8x32xf32>
    %131 = vector.broadcast %113 : vector<1x32xf32> to vector<8x32xf32>
    %132 = arith.mulf %130, %131 : vector<8x32xf32>
    %133 = vector.broadcast %114 : vector<1x32xf32> to vector<8x32xf32>
    %134 = arith.addf %132, %133 : vector<8x32xf32>
    %135 = arith.truncf %134 : vector<8x32xf32> to vector<8x32xbf16>
    %c0_62 = arith.constant 0 : index
    %c0_63 = arith.constant 0 : index
    %136 = vector.load %arg20[%c0_62, %c0_63] : memref<32x32xbf16, #tpu.memory_space<vmem>>, vector<32x32xbf16>
    %cst_64 = arith.constant dense<0.000000e+00> : vector<8x32xf32>
    %137 = tpu.matmul %135, %136, %cst_64 {dimension_numbers = #tpu.dot_dimension_numbers<[1], [0], [0], [1], [0, 0, 1, 1], [], []>} : vector<8x32xbf16>, vector<32x32xbf16>, vector<8x32xf32> -> vector<8x32xf32>
    %c0_65 = arith.constant 0 : index
    %c0_66 = arith.constant 0 : index
    %138 = vector.load %arg21[%c0_65, %c0_66] : memref<1x32xf32, #tpu.memory_space<vmem>>, vector<1x32xf32>
    %139 = vector.broadcast %138 : vector<1x32xf32> to vector<8x32xf32>
    %140 = arith.addf %137, %139 : vector<8x32xf32>
    %c0_67 = arith.constant 0 : index
    %c0_68 = arith.constant 0 : index
    %141 = vector.load %arg22[%c0_67, %c0_68] : memref<32x32xbf16, #tpu.memory_space<vmem>>, vector<32x32xbf16>
    %cst_69 = arith.constant dense<0.000000e+00> : vector<8x32xf32>
    %142 = tpu.matmul %135, %141, %cst_69 {dimension_numbers = #tpu.dot_dimension_numbers<[1], [0], [0], [1], [0, 0, 1, 1], [], []>} : vector<8x32xbf16>, vector<32x32xbf16>, vector<8x32xf32> -> vector<8x32xf32>
    %c0_70 = arith.constant 0 : index
    %c0_71 = arith.constant 0 : index
    %143 = vector.load %arg23[%c0_70, %c0_71] : memref<1x32xf32, #tpu.memory_space<vmem>>, vector<1x32xf32>
    %144 = vector.broadcast %143 : vector<1x32xf32> to vector<8x32xf32>
    %145 = arith.addf %142, %144 : vector<8x32xf32>
    %c0_72 = arith.constant 0 : index
    %c0_73 = arith.constant 0 : index
    %146 = vector.load %arg24[%c0_72, %c0_73] : memref<32x32xbf16, #tpu.memory_space<vmem>>, vector<32x32xbf16>
    %cst_74 = arith.constant dense<0.000000e+00> : vector<8x32xf32>
    %147 = tpu.matmul %135, %146, %cst_74 {dimension_numbers = #tpu.dot_dimension_numbers<[1], [0], [0], [1], [0, 0, 1, 1], [], []>} : vector<8x32xbf16>, vector<32x32xbf16>, vector<8x32xf32> -> vector<8x32xf32>
    %c0_75 = arith.constant 0 : index
    %c0_76 = arith.constant 0 : index
    %148 = vector.load %arg25[%c0_75, %c0_76] : memref<1x32xf32, #tpu.memory_space<vmem>>, vector<1x32xf32>
    %149 = vector.broadcast %148 : vector<1x32xf32> to vector<8x32xf32>
    %150 = arith.addf %147, %149 : vector<8x32xf32>
    %cst_77 = arith.constant 0.353553385 : f32
    %151 = vector.broadcast %cst_77 : f32 to vector<8x32xf32>
    %152 = arith.mulf %140, %151 : vector<8x32xf32>
    %c0_78 = arith.constant 0 : index
    %c0_79 = arith.constant 0 : index
    %c0_80 = arith.constant 0 : index
    %153 = vector.load %arg26[%c0_78, %c0_79, %c0_80] : memref<4x8x32xbf16, #tpu.memory_space<vmem>>, vector<4x8x32xbf16>
    %154 = vector.extract_strided_slice %152 {offsets = [0, 0], sizes = [8, 8], strides = [1, 1]} : vector<8x32xf32> to vector<8x8xf32>
    %155 = vector.extract_strided_slice %152 {offsets = [0, 8], sizes = [8, 8], strides = [1, 1]} : vector<8x32xf32> to vector<8x8xf32>
    %156 = vector.extract_strided_slice %152 {offsets = [0, 16], sizes = [8, 8], strides = [1, 1]} : vector<8x32xf32> to vector<8x8xf32>
    %157 = vector.extract_strided_slice %152 {offsets = [0, 24], sizes = [8, 8], strides = [1, 1]} : vector<8x32xf32> to vector<8x8xf32>
    %158 = vector.shape_cast %154 : vector<8x8xf32> to vector<1x8x8xf32>
    %159 = vector.shape_cast %155 : vector<8x8xf32> to vector<1x8x8xf32>
    %160 = vector.shape_cast %156 : vector<8x8xf32> to vector<1x8x8xf32>
    %161 = vector.shape_cast %157 : vector<8x8xf32> to vector<1x8x8xf32>
    %162 = tpu.concatenate %158, %159, %160, %161 in 0 : vector<1x8x8xf32>, vector<1x8x8xf32>, vector<1x8x8xf32>, vector<1x8x8xf32> -> vector<4x8x8xf32>
    %163 = arith.truncf %162 : vector<4x8x8xf32> to vector<4x8x8xbf16>
    %164 = vector.extract_strided_slice %145 {offsets = [0, 0], sizes = [8, 8], strides = [1, 1]} : vector<8x32xf32> to vector<8x8xf32>
    %165 = vector.extract_strided_slice %145 {offsets = [0, 8], sizes = [8, 8], strides = [1, 1]} : vector<8x32xf32> to vector<8x8xf32>
    %166 = vector.extract_strided_slice %145 {offsets = [0, 16], sizes = [8, 8], strides = [1, 1]} : vector<8x32xf32> to vector<8x8xf32>
    %167 = vector.extract_strided_slice %145 {offsets = [0, 24], sizes = [8, 8], strides = [1, 1]} : vector<8x32xf32> to vector<8x8xf32>
    %168 = vector.shape_cast %164 : vector<8x8xf32> to vector<1x8x8xf32>
    %169 = vector.shape_cast %165 : vector<8x8xf32> to vector<1x8x8xf32>
    %170 = vector.shape_cast %166 : vector<8x8xf32> to vector<1x8x8xf32>
    %171 = vector.shape_cast %167 : vector<8x8xf32> to vector<1x8x8xf32>
    %172 = tpu.concatenate %168, %169, %170, %171 in 0 : vector<1x8x8xf32>, vector<1x8x8xf32>, vector<1x8x8xf32>, vector<1x8x8xf32> -> vector<4x8x8xf32>
    %173 = arith.truncf %172 : vector<4x8x8xf32> to vector<4x8x8xbf16>
    %174 = vector.extract_strided_slice %150 {offsets = [0, 0], sizes = [8, 8], strides = [1, 1]} : vector<8x32xf32> to vector<8x8xf32>
    %175 = vector.extract_strided_slice %150 {offsets = [0, 8], sizes = [8, 8], strides = [1, 1]} : vector<8x32xf32> to vector<8x8xf32>
    %176 = vector.extract_strided_slice %150 {offsets = [0, 16], sizes = [8, 8], strides = [1, 1]} : vector<8x32xf32> to vector<8x8xf32>
    %177 = vector.extract_strided_slice %150 {offsets = [0, 24], sizes = [8, 8], strides = [1, 1]} : vector<8x32xf32> to vector<8x8xf32>
    %178 = vector.shape_cast %174 : vector<8x8xf32> to vector<1x8x8xf32>
    %179 = vector.shape_cast %175 : vector<8x8xf32> to vector<1x8x8xf32>
    %180 = vector.shape_cast %176 : vector<8x8xf32> to vector<1x8x8xf32>
    %181 = vector.shape_cast %177 : vector<8x8xf32> to vector<1x8x8xf32>
    %182 = tpu.concatenate %178, %179, %180, %181 in 0 : vector<1x8x8xf32>, vector<1x8x8xf32>, vector<1x8x8xf32>, vector<1x8x8xf32> -> vector<4x8x8xf32>
    %183 = arith.truncf %182 : vector<4x8x8xf32> to vector<4x8x8xbf16>
    "tpu.trace_start"() <{level = 10 : i32, message = "hqd,hkd->hqk"}> : () -> ()
    %cst_81 = arith.constant dense<0.000000e+00> : vector<4x8x8xf32>
    %184 = tpu.matmul %163, %173, %cst_81 {dimension_numbers = #tpu.dot_dimension_numbers<[2], [2], [1], [1], [0, 0, 0, 1, 1, 1], [0], [0]>} : vector<4x8x8xbf16>, vector<4x8x8xbf16>, vector<4x8x8xf32> -> vector<4x8x8xf32>
    "tpu.trace_stop"() : () -> ()
    %cst_82 = arith.constant dense<0xFF800000> : vector<4x8xf32>
    %185 = vector.multi_reduction <maximumf>, %184, %cst_82 [2] : vector<4x8x8xf32> to vector<4x8xf32>
    %186 = vector.shape_cast %185 : vector<4x8xf32> to vector<4x8x1xf32>
    %187 = vector.broadcast %186 : vector<4x8x1xf32> to vector<4x8x8xf32>
    %188 = arith.subf %184, %187 : vector<4x8x8xf32>
    %189 = math.exp %188 : vector<4x8x8xf32>
    %cst_83 = arith.constant dense<0.000000e+00> : vector<4x8xf32>
    %190 = vector.multi_reduction <add>, %189, %cst_83 [2] : vector<4x8x8xf32> to vector<4x8xf32>
    %191 = vector.shape_cast %190 : vector<4x8xf32> to vector<4x8x1xf32>
    %192 = tpu.reciprocal %191 {approx = true} : vector<4x8x1xf32> -> vector<4x8x1xf32>
    %193 = vector.broadcast %192 : vector<4x8x1xf32> to vector<4x8x8xf32>
    %194 = arith.mulf %189, %193 : vector<4x8x8xf32>
    %195 = arith.truncf %194 : vector<4x8x8xf32> to vector<4x8x8xbf16>
    "tpu.trace_start"() <{level = 10 : i32, message = "hqk,hkd->hqd"}> : () -> ()
    %cst_84 = arith.constant dense<0.000000e+00> : vector<4x8x8xf32>
    %196 = tpu.matmul %195, %183, %cst_84 {dimension_numbers = #tpu.dot_dimension_numbers<[2], [1], [1], [2], [0, 0, 0, 1, 1, 2], [0], [0]>} : vector<4x8x8xbf16>, vector<4x8x8xbf16>, vector<4x8x8xf32> -> vector<4x8x8xf32>
    "tpu.trace_stop"() : () -> ()
    %197 = arith.truncf %196 : vector<4x8x8xf32> to vector<4x8x8xbf16>
    "tpu.trace_start"() <{level = 10 : i32, message = "hsd,hde->hse"}> : () -> ()
    %cst_85 = arith.constant dense<0.000000e+00> : vector<4x8x32xf32>
    %198 = tpu.matmul %197, %153, %cst_85 {dimension_numbers = #tpu.dot_dimension_numbers<[2], [1], [1], [2], [0, 0, 0, 1, 1, 2], [0], [0]>} : vector<4x8x8xbf16>, vector<4x8x32xbf16>, vector<4x8x32xf32> -> vector<4x8x32xf32>
    "tpu.trace_stop"() : () -> ()
    %cst_86 = arith.constant dense<0.000000e+00> : vector<8x32xf32>
    %199 = vector.multi_reduction <add>, %198, %cst_86 [0] : vector<4x8x32xf32> to vector<8x32xf32>
    %c0_87 = arith.constant 0 : index
    %c0_88 = arith.constant 0 : index
    %200 = vector.load %arg27[%c0_87, %c0_88] : memref<1x32xf32, #tpu.memory_space<vmem>>, vector<1x32xf32>
    %201 = vector.broadcast %200 : vector<1x32xf32> to vector<8x32xf32>
    %202 = arith.addf %199, %201 : vector<8x32xf32>
    %203 = arith.addf %134, %202 : vector<8x32xf32>
    %c0_89 = arith.constant 0 : index
    %c0_90 = arith.constant 0 : index
    %204 = vector.load %arg28[%c0_89, %c0_90] : memref<1x32xf32, #tpu.memory_space<vmem>>, vector<1x32xf32>
    %c0_91 = arith.constant 0 : index
    %c0_92 = arith.constant 0 : index
    %205 = vector.load %arg29[%c0_91, %c0_92] : memref<1x32xf32, #tpu.memory_space<vmem>>, vector<1x32xf32>
    %cst_93 = arith.constant dense<0.000000e+00> : vector<8xf32>
    %206 = vector.multi_reduction <add>, %203, %cst_93 [1] : vector<8x32xf32> to vector<8xf32>
    %207 = vector.shape_cast %206 : vector<8xf32> to vector<8x1xf32>
    %cst_94 = arith.constant 3.200000e+01 : f32
    %208 = vector.broadcast %cst_94 : f32 to vector<8x1xf32>
    %209 = arith.divf %207, %208 : vector<8x1xf32>
    %210 = vector.broadcast %209 : vector<8x1xf32> to vector<8x32xf32>
    %211 = arith.subf %203, %210 : vector<8x32xf32>
    %212 = arith.mulf %211, %211 : vector<8x32xf32>
    %cst_95 = arith.constant dense<0.000000e+00> : vector<8xf32>
    %213 = vector.multi_reduction <add>, %212, %cst_95 [1] : vector<8x32xf32> to vector<8xf32>
    %214 = vector.shape_cast %213 : vector<8xf32> to vector<8x1xf32>
    %cst_96 = arith.constant 3.200000e+01 : f32
    %215 = vector.broadcast %cst_96 : f32 to vector<8x1xf32>
    %216 = arith.divf %214, %215 : vector<8x1xf32>
    %cst_97 = arith.constant 9.99999974E-6 : f32
    %217 = vector.broadcast %cst_97 : f32 to vector<8x1xf32>
    %218 = arith.addf %216, %217 : vector<8x1xf32>
    %219 = math.rsqrt %218 : vector<8x1xf32>
    %220 = vector.broadcast %219 : vector<8x1xf32> to vector<8x32xf32>
    %221 = arith.mulf %211, %220 : vector<8x32xf32>
    %222 = vector.broadcast %204 : vector<1x32xf32> to vector<8x32xf32>
    %223 = arith.mulf %221, %222 : vector<8x32xf32>
    %224 = vector.broadcast %205 : vector<1x32xf32> to vector<8x32xf32>
    %225 = arith.addf %223, %224 : vector<8x32xf32>
    %226 = arith.truncf %225 : vector<8x32xf32> to vector<8x32xbf16>
    %c0_98 = arith.constant 0 : index
    %c0_99 = arith.constant 0 : index
    %227 = vector.load %arg30[%c0_98, %c0_99] : memref<32x64xbf16, #tpu.memory_space<vmem>>, vector<32x64xbf16>
    %cst_100 = arith.constant dense<0.000000e+00> : vector<8x64xf32>
    %228 = tpu.matmul %226, %227, %cst_100 {dimension_numbers = #tpu.dot_dimension_numbers<[1], [0], [0], [1], [0, 0, 1, 1], [], []>} : vector<8x32xbf16>, vector<32x64xbf16>, vector<8x64xf32> -> vector<8x64xf32>
    %c0_101 = arith.constant 0 : index
    %c0_102 = arith.constant 0 : index
    %229 = vector.load %arg31[%c0_101, %c0_102] : memref<1x64xf32, #tpu.memory_space<vmem>>, vector<1x64xf32>
    %230 = vector.broadcast %229 : vector<1x64xf32> to vector<8x64xf32>
    %231 = arith.addf %228, %230 : vector<8x64xf32>
    %cst_103 = arith.constant 0.000000e+00 : f32
    %232 = vector.broadcast %cst_103 : f32 to vector<8x64xf32>
    %233 = arith.maximumf %231, %232 : vector<8x64xf32>
    %234 = arith.truncf %233 : vector<8x64xf32> to vector<8x64xbf16>
    %c0_104 = arith.constant 0 : index
    %c0_105 = arith.constant 0 : index
    %235 = vector.load %arg32[%c0_104, %c0_105] : memref<64x32xbf16, #tpu.memory_space<vmem>>, vector<64x32xbf16>
    %cst_106 = arith.constant dense<0.000000e+00> : vector<8x32xf32>
    %236 = tpu.matmul %234, %235, %cst_106 {dimension_numbers = #tpu.dot_dimension_numbers<[1], [0], [0], [1], [0, 0, 1, 1], [], []>} : vector<8x64xbf16>, vector<64x32xbf16>, vector<8x32xf32> -> vector<8x32xf32>
    %c0_107 = arith.constant 0 : index
    %c0_108 = arith.constant 0 : index
    %237 = vector.load %arg33[%c0_107, %c0_108] : memref<1x32xf32, #tpu.memory_space<vmem>>, vector<1x32xf32>
    %238 = vector.broadcast %237 : vector<1x32xf32> to vector<8x32xf32>
    %239 = arith.addf %236, %238 : vector<8x32xf32>
    %240 = arith.addf %225, %239 : vector<8x32xf32>
    %c0_109 = arith.constant 0 : index
    %c0_110 = arith.constant 0 : index
    %241 = vector.load %arg34[%c0_109, %c0_110] : memref<1x32xf32, #tpu.memory_space<vmem>>, vector<1x32xf32>
    %c0_111 = arith.constant 0 : index
    %c0_112 = arith.constant 0 : index
    %242 = vector.load %arg35[%c0_111, %c0_112] : memref<1x32xf32, #tpu.memory_space<vmem>>, vector<1x32xf32>
    %cst_113 = arith.constant dense<0.000000e+00> : vector<8xf32>
    %243 = vector.multi_reduction <add>, %240, %cst_113 [1] : vector<8x32xf32> to vector<8xf32>
    %244 = vector.shape_cast %243 : vector<8xf32> to vector<8x1xf32>
    %cst_114 = arith.constant 3.200000e+01 : f32
    %245 = vector.broadcast %cst_114 : f32 to vector<8x1xf32>
    %246 = arith.divf %244, %245 : vector<8x1xf32>
    %247 = vector.broadcast %246 : vector<8x1xf32> to vector<8x32xf32>
    %248 = arith.subf %240, %247 : vector<8x32xf32>
    %249 = arith.mulf %248, %248 : vector<8x32xf32>
    %cst_115 = arith.constant dense<0.000000e+00> : vector<8xf32>
    %250 = vector.multi_reduction <add>, %249, %cst_115 [1] : vector<8x32xf32> to vector<8xf32>
    %251 = vector.shape_cast %250 : vector<8xf32> to vector<8x1xf32>
    %cst_116 = arith.constant 3.200000e+01 : f32
    %252 = vector.broadcast %cst_116 : f32 to vector<8x1xf32>
    %253 = arith.divf %251, %252 : vector<8x1xf32>
    %cst_117 = arith.constant 9.99999974E-6 : f32
    %254 = vector.broadcast %cst_117 : f32 to vector<8x1xf32>
    %255 = arith.addf %253, %254 : vector<8x1xf32>
    %256 = math.rsqrt %255 : vector<8x1xf32>
    %257 = vector.broadcast %256 : vector<8x1xf32> to vector<8x32xf32>
    %258 = arith.mulf %248, %257 : vector<8x32xf32>
    %259 = vector.broadcast %241 : vector<1x32xf32> to vector<8x32xf32>
    %260 = arith.mulf %258, %259 : vector<8x32xf32>
    %261 = vector.broadcast %242 : vector<1x32xf32> to vector<8x32xf32>
    %262 = arith.addf %260, %261 : vector<8x32xf32>
    %263 = vector.shape_cast %262 : vector<8x32xf32> to vector<1x8x32xf32>
    %cst_118 = arith.constant dense<0.000000e+00> : vector<1x32xf32>
    %264 = vector.multi_reduction <add>, %263, %cst_118 [1] : vector<1x8x32xf32> to vector<1x32xf32>
    %c0_119 = arith.constant 0 : index
    %c0_120 = arith.constant 0 : index
    %c0_121 = arith.constant 0 : index
    %265 = vector.load %arg51[%c0_119, %c0_120, %c0_121] : memref<1x1x32xf32, #tpu.memory_space<vmem>>, vector<1x1x32xf32>
    %266 = vector.shape_cast %265 : vector<1x1x32xf32> to vector<1x32xf32>
    %267 = vector.shape_cast %264 : vector<1x32xf32> to vector<1x1x32xf32>
    tpu.vector_store %arg51[%c0_119, %c0_120, %c0_121], %267 {strides = array<i32>} : memref<1x1x32xf32, #tpu.memory_space<vmem>>, vector<1x1x32xf32>,
    %268 = arith.truncf %264 : vector<1x32xf32> to vector<1x32xbf16>
    %c0_122 = arith.constant 0 : index
    %c0_123 = arith.constant 0 : index
    %269 = vector.load %arg36[%c0_122, %c0_123] : memref<32x64xbf16, #tpu.memory_space<vmem>>, vector<32x64xbf16>
    %cst_124 = arith.constant dense<0.000000e+00> : vector<1x64xf32>
    %270 = tpu.matmul %268, %269, %cst_124 {dimension_numbers = #tpu.dot_dimension_numbers<[1], [0], [0], [1], [0, 0, 1, 1], [], []>} : vector<1x32xbf16>, vector<32x64xbf16>, vector<1x64xf32> -> vector<1x64xf32>
    %c0_125 = arith.constant 0 : index
    %c0_126 = arith.constant 0 : index
    %271 = vector.load %arg37[%c0_125, %c0_126] : memref<1x64xf32, #tpu.memory_space<vmem>>, vector<1x64xf32>
    %272 = arith.addf %270, %271 : vector<1x64xf32>
    %c0_127 = arith.constant 0 : index
    %c0_128 = arith.constant 0 : index
    %273 = vector.load %arg44[%c0_127, %c0_128] : memref<1x64xf32, #tpu.memory_space<vmem>>, vector<1x64xf32>
    %c0_129 = arith.constant 0 : index
    %c0_130 = arith.constant 0 : index
    %274 = vector.load %arg45[%c0_129, %c0_130] : memref<1x64xf32, #tpu.memory_space<vmem>>, vector<1x64xf32>
    %cst_131 = arith.constant dense<0.000000e+00> : vector<1xf32>
    %275 = vector.multi_reduction <add>, %272, %cst_131 [1] : vector<1x64xf32> to vector<1xf32>
    %276 = vector.shape_cast %275 : vector<1xf32> to vector<1x1xf32>
    %cst_132 = arith.constant 6.400000e+01 : f32
    %277 = vector.broadcast %cst_132 : f32 to vector<1x1xf32>
    %278 = arith.divf %276, %277 : vector<1x1xf32>
    %279 = vector.broadcast %278 : vector<1x1xf32> to vector<1x64xf32>
    %280 = arith.subf %272, %279 : vector<1x64xf32>
    %281 = arith.mulf %280, %280 : vector<1x64xf32>
    %cst_133 = arith.constant dense<0.000000e+00> : vector<1xf32>
    %282 = vector.multi_reduction <add>, %281, %cst_133 [1] : vector<1x64xf32> to vector<1xf32>
    %283 = vector.shape_cast %282 : vector<1xf32> to vector<1x1xf32>
    %cst_134 = arith.constant 6.400000e+01 : f32
    %284 = vector.broadcast %cst_134 : f32 to vector<1x1xf32>
    %285 = arith.divf %283, %284 : vector<1x1xf32>
    %cst_135 = arith.constant 9.99999974E-6 : f32
    %286 = vector.broadcast %cst_135 : f32 to vector<1x1xf32>
    %287 = arith.addf %285, %286 : vector<1x1xf32>
    %288 = math.rsqrt %287 : vector<1x1xf32>
    %289 = vector.broadcast %288 : vector<1x1xf32> to vector<1x64xf32>
    %290 = arith.mulf %280, %289 : vector<1x64xf32>
    %291 = arith.mulf %290, %273 : vector<1x64xf32>
    %292 = arith.addf %291, %274 : vector<1x64xf32>
    %c0_136 = arith.constant 0 : index
    %c0_137 = arith.constant 0 : index
    %293 = vector.load %arg46[%c0_136, %c0_137] : memref<1x64xf32, #tpu.memory_space<vmem>>, vector<1x64xf32>
    %c0_138 = arith.constant 0 : index
    %c0_139 = arith.constant 0 : index
    %294 = vector.load %arg47[%c0_138, %c0_139] : memref<1x64xf32, #tpu.memory_space<vmem>>, vector<1x64xf32>
    %cst_140 = arith.constant dense<0.000000e+00> : vector<1xf32>
    %295 = vector.multi_reduction <add>, %292, %cst_140 [1] : vector<1x64xf32> to vector<1xf32>
    %296 = vector.shape_cast %295 : vector<1xf32> to vector<1x1xf32>
    %cst_141 = arith.constant 6.400000e+01 : f32
    %297 = vector.broadcast %cst_141 : f32 to vector<1x1xf32>
    %298 = arith.divf %296, %297 : vector<1x1xf32>
    %299 = vector.broadcast %298 : vector<1x1xf32> to vector<1x64xf32>
    %300 = arith.subf %292, %299 : vector<1x64xf32>
    %301 = arith.mulf %300, %300 : vector<1x64xf32>
    %cst_142 = arith.constant dense<0.000000e+00> : vector<1xf32>
    %302 = vector.multi_reduction <add>, %301, %cst_142 [1] : vector<1x64xf32> to vector<1xf32>
    %303 = vector.shape_cast %302 : vector<1xf32> to vector<1x1xf32>
    %cst_143 = arith.constant 6.400000e+01 : f32
    %304 = vector.broadcast %cst_143 : f32 to vector<1x1xf32>
    %305 = arith.divf %303, %304 : vector<1x1xf32>
    %cst_144 = arith.constant 9.99999974E-6 : f32
    %306 = vector.broadcast %cst_144 : f32 to vector<1x1xf32>
    %307 = arith.addf %305, %306 : vector<1x1xf32>
    %308 = math.rsqrt %307 : vector<1x1xf32>
    %309 = vector.broadcast %308 : vector<1x1xf32> to vector<1x64xf32>
    %310 = arith.mulf %300, %309 : vector<1x64xf32>
    %311 = arith.mulf %310, %293 : vector<1x64xf32>
    %312 = arith.addf %311, %294 : vector<1x64xf32>
    %cst_145 = arith.constant 0.000000e+00 : f32
    %313 = vector.broadcast %cst_145 : f32 to vector<1x64xf32>
    %314 = arith.maximumf %312, %313 : vector<1x64xf32>
    %315 = arith.truncf %314 : vector<1x64xf32> to vector<1x64xbf16>
    %c0_146 = arith.constant 0 : index
    %c0_147 = arith.constant 0 : index
    %316 = vector.load %arg38[%c0_146, %c0_147] : memref<64x64xbf16, #tpu.memory_space<vmem>>, vector<64x64xbf16>
    %cst_148 = arith.constant dense<0.000000e+00> : vector<1x64xf32>
    %317 = tpu.matmul %315, %316, %cst_148 {dimension_numbers = #tpu.dot_dimension_numbers<[1], [0], [0], [1], [0, 0, 1, 1], [], []>} : vector<1x64xbf16>, vector<64x64xbf16>, vector<1x64xf32> -> vector<1x64xf32>
    %c0_149 = arith.constant 0 : index
    %c0_150 = arith.constant 0 : index
    %318 = vector.load %arg39[%c0_149, %c0_150] : memref<1x64xf32, #tpu.memory_space<vmem>>, vector<1x64xf32>
    %319 = arith.addf %317, %318 : vector<1x64xf32>
    %c0_151 = arith.constant 0 : index
    %c0_152 = arith.constant 0 : index
    %320 = vector.load %arg48[%c0_151, %c0_152] : memref<1x64xf32, #tpu.memory_space<vmem>>, vector<1x64xf32>
    %c0_153 = arith.constant 0 : index
    %c0_154 = arith.constant 0 : index
    %321 = vector.load %arg49[%c0_153, %c0_154] : memref<1x64xf32, #tpu.memory_space<vmem>>, vector<1x64xf32>
    %cst_155 = arith.constant dense<0.000000e+00> : vector<1xf32>
    %322 = vector.multi_reduction <add>, %319, %cst_155 [1] : vector<1x64xf32> to vector<1xf32>
    %323 = vector.shape_cast %322 : vector<1xf32> to vector<1x1xf32>
    %cst_156 = arith.constant 6.400000e+01 : f32
    %324 = vector.broadcast %cst_156 : f32 to vector<1x1xf32>
    %325 = arith.divf %323, %324 : vector<1x1xf32>
    %326 = vector.broadcast %325 : vector<1x1xf32> to vector<1x64xf32>
    %327 = arith.subf %319, %326 : vector<1x64xf32>
    %328 = arith.mulf %327, %327 : vector<1x64xf32>
    %cst_157 = arith.constant dense<0.000000e+00> : vector<1xf32>
    %329 = vector.multi_reduction <add>, %328, %cst_157 [1] : vector<1x64xf32> to vector<1xf32>
    %330 = vector.shape_cast %329 : vector<1xf32> to vector<1x1xf32>
    %cst_158 = arith.constant 6.400000e+01 : f32
    %331 = vector.broadcast %cst_158 : f32 to vector<1x1xf32>
    %332 = arith.divf %330, %331 : vector<1x1xf32>
    %cst_159 = arith.constant 9.99999974E-6 : f32
    %333 = vector.broadcast %cst_159 : f32 to vector<1x1xf32>
    %334 = arith.addf %332, %333 : vector<1x1xf32>
    %335 = math.rsqrt %334 : vector<1x1xf32>
    %336 = vector.broadcast %335 : vector<1x1xf32> to vector<1x64xf32>
    %337 = arith.mulf %327, %336 : vector<1x64xf32>
    %338 = arith.mulf %337, %320 : vector<1x64xf32>
    %339 = arith.addf %338, %321 : vector<1x64xf32>
    %cst_160 = arith.constant 0.000000e+00 : f32
    %340 = vector.broadcast %cst_160 : f32 to vector<1x64xf32>
    %341 = arith.maximumf %339, %340 : vector<1x64xf32>
    %342 = arith.truncf %341 : vector<1x64xf32> to vector<1x64xbf16>
    %c0_161 = arith.constant 0 : index
    %c0_162 = arith.constant 0 : index
    %343 = vector.load %arg40[%c0_161, %c0_162] : memref<64x64xbf16, #tpu.memory_space<vmem>>, vector<64x64xbf16>
    %cst_163 = arith.constant dense<0.000000e+00> : vector<1x64xf32>
    %344 = tpu.matmul %342, %343, %cst_163 {dimension_numbers = #tpu.dot_dimension_numbers<[1], [0], [0], [1], [0, 0, 1, 1], [], []>} : vector<1x64xbf16>, vector<64x64xbf16>, vector<1x64xf32> -> vector<1x64xf32>
    %c0_164 = arith.constant 0 : index
    %c0_165 = arith.constant 0 : index
    %345 = vector.load %arg41[%c0_164, %c0_165] : memref<1x64xf32, #tpu.memory_space<vmem>>, vector<1x64xf32>
    %346 = arith.addf %344, %345 : vector<1x64xf32>
    %cst_166 = arith.constant 0.000000e+00 : f32
    %347 = vector.broadcast %cst_166 : f32 to vector<1x64xf32>
    %348 = arith.maximumf %346, %347 : vector<1x64xf32>
    %349 = arith.truncf %348 : vector<1x64xf32> to vector<1x64xbf16>
    %c0_167 = arith.constant 0 : index
    %c0_168 = arith.constant 0 : index
    %350 = vector.load %arg42[%c0_167, %c0_168] : memref<64x8xbf16, #tpu.memory_space<vmem>>, vector<64x8xbf16>
    %cst_169 = arith.constant dense<0.000000e+00> : vector<1x8xf32>
    %351 = tpu.matmul %349, %350, %cst_169 {dimension_numbers = #tpu.dot_dimension_numbers<[1], [0], [0], [1], [0, 0, 1, 1], [], []>} : vector<1x64xbf16>, vector<64x8xbf16>, vector<1x8xf32> -> vector<1x8xf32>
    %c0_170 = arith.constant 0 : index
    %c0_171 = arith.constant 0 : index
    %352 = vector.load %arg43[%c0_170, %c0_171] : memref<1x8xf32, #tpu.memory_space<vmem>>, vector<1x8xf32>
    %353 = arith.addf %351, %352 : vector<1x8xf32>
    %c0_172 = arith.constant 0 : index
    %c0_173 = arith.constant 0 : index
    %c0_174 = arith.constant 0 : index
    %354 = vector.load %arg50[%c0_172, %c0_173, %c0_174] : memref<1x1x8xf32, #tpu.memory_space<vmem>>, vector<1x1x8xf32>
    %355 = vector.shape_cast %354 : vector<1x1x8xf32> to vector<1x8xf32>
    %356 = vector.shape_cast %353 : vector<1x8xf32> to vector<1x1x8xf32>
    tpu.vector_store %arg50[%c0_172, %c0_173, %c0_174], %356 {strides = array<i32>} : memref<1x1x8xf32, #tpu.memory_space<vmem>>, vector<1x1x8xf32>,
    return
  }
  func.func @transform_0(%arg0: i32) -> (i32, i32, i32) {
    %c0_i32 = arith.constant 0 : i32
    %c0_i32_0 = arith.constant 0 : i32
    %c0_i32_1 = arith.constant 0 : i32
    return %arg0, %c0_i32, %c0_i32_0 : i32, i32, i32
  }
  func.func @transform_1(%arg0: i32) -> (i32, i32) {
    %c0_i32 = arith.constant 0 : i32
    %c0_i32_0 = arith.constant 0 : i32
    %c0_i32_1 = arith.constant 0 : i32
    return %c0_i32, %c0_i32_0 : i32, i32
  }
  func.func @transform_2(%arg0: i32) -> (i32, i32) {
    %c0_i32 = arith.constant 0 : i32
    %c0_i32_0 = arith.constant 0 : i32
    %c0_i32_1 = arith.constant 0 : i32
    return %c0_i32, %c0_i32_0 : i32, i32
  }
  func.func @transform_3(%arg0: i32) -> (i32, i32) {
    %c0_i32 = arith.constant 0 : i32
    %c0_i32_0 = arith.constant 0 : i32
    %c0_i32_1 = arith.constant 0 : i32
    return %c0_i32, %c0_i32_0 : i32, i32
  }
  func.func @transform_4(%arg0: i32) -> (i32, i32) {
    %c0_i32 = arith.constant 0 : i32
    %c0_i32_0 = arith.constant 0 : i32
    %c0_i32_1 = arith.constant 0 : i32
    return %c0_i32, %c0_i32_0 : i32, i32
  }
  func.func @transform_5(%arg0: i32) -> (i32, i32) {
    %c0_i32 = arith.constant 0 : i32
    %c0_i32_0 = arith.constant 0 : i32
    %c0_i32_1 = arith.constant 0 : i32
    return %c0_i32, %c0_i32_0 : i32, i32
  }
  func.func @transform_6(%arg0: i32) -> (i32, i32) {
    %c0_i32 = arith.constant 0 : i32
    %c0_i32_0 = arith.constant 0 : i32
    %c0_i32_1 = arith.constant 0 : i32
    return %c0_i32, %c0_i32_0 : i32, i32
  }
  func.func @transform_7(%arg0: i32) -> (i32, i32) {
    %c0_i32 = arith.constant 0 : i32
    %c0_i32_0 = arith.constant 0 : i32
    %c0_i32_1 = arith.constant 0 : i32
    return %c0_i32, %c0_i32_0 : i32, i32
  }
  func.func @transform_8(%arg0: i32) -> (i32, i32) {
    %c0_i32 = arith.constant 0 : i32
    %c0_i32_0 = arith.constant 0 : i32
    %c0_i32_1 = arith.constant 0 : i32
    return %c0_i32, %c0_i32_0 : i32, i32
  }
  func.func @transform_9(%arg0: i32) -> (i32, i32, i32) {
    %c0_i32 = arith.constant 0 : i32
    %c0_i32_0 = arith.constant 0 : i32
    %c0_i32_1 = arith.constant 0 : i32
    %c0_i32_2 = arith.constant 0 : i32
    return %c0_i32, %c0_i32_0, %c0_i32_1 : i32, i32, i32
  }
  func.func @transform_10(%arg0: i32) -> (i32, i32) {
    %c0_i32 = arith.constant 0 : i32
    %c0_i32_0 = arith.constant 0 : i32
    %c0_i32_1 = arith.constant 0 : i32
    return %c0_i32, %c0_i32_0 : i32, i32
  }
  func.func @transform_11(%arg0: i32) -> (i32, i32) {
    %c0_i32 = arith.constant 0 : i32
    %c0_i32_0 = arith.constant 0 : i32
    %c0_i32_1 = arith.constant 0 : i32
    return %c0_i32, %c0_i32_0 : i32, i32
  }
  func.func @transform_12(%arg0: i32) -> (i32, i32) {
    %c0_i32 = arith.constant 0 : i32
    %c0_i32_0 = arith.constant 0 : i32
    %c0_i32_1 = arith.constant 0 : i32
    return %c0_i32, %c0_i32_0 : i32, i32
  }
  func.func @transform_13(%arg0: i32) -> (i32, i32) {
    %c0_i32 = arith.constant 0 : i32
    %c0_i32_0 = arith.constant 0 : i32
    %c0_i32_1 = arith.constant 0 : i32
    return %c0_i32, %c0_i32_0 : i32, i32
  }
  func.func @transform_14(%arg0: i32) -> (i32, i32) {
    %c0_i32 = arith.constant 0 : i32
    %c0_i32_0 = arith.constant 0 : i32
    %c0_i32_1 = arith.constant 0 : i32
    return %c0_i32, %c0_i32_0 : i32, i32
  }
  func.func @transform_15(%arg0: i32) -> (i32, i32) {
    %c0_i32 = arith.constant 0 : i32
    %c0_i32_0 = arith.constant 0 : i32
    %c0_i32_1 = arith.constant 0 : i32
    return %c0_i32, %c0_i32_0 : i32, i32
  }
  func.func @transform_16(%arg0: i32) -> (i32, i32) {
    %c0_i32 = arith.constant 0 : i32
    %c0_i32_0 = arith.constant 0 : i32
    %c0_i32_1 = arith.constant 0 : i32
    return %c0_i32, %c0_i32_0 : i32, i32
  }
  func.func @transform_17(%arg0: i32) -> (i32, i32) {
    %c0_i32 = arith.constant 0 : i32
    %c0_i32_0 = arith.constant 0 : i32
    %c0_i32_1 = arith.constant 0 : i32
    return %c0_i32, %c0_i32_0 : i32, i32
  }
  func.func @transform_18(%arg0: i32) -> (i32, i32) {
    %c0_i32 = arith.constant 0 : i32
    %c0_i32_0 = arith.constant 0 : i32
    %c0_i32_1 = arith.constant 0 : i32
    return %c0_i32, %c0_i32_0 : i32, i32
  }
  func.func @transform_19(%arg0: i32) -> (i32, i32) {
    %c0_i32 = arith.constant 0 : i32
    %c0_i32_0 = arith.constant 0 : i32
    %c0_i32_1 = arith.constant 0 : i32
    return %c0_i32, %c0_i32_0 : i32, i32
  }
  func.func @transform_20(%arg0: i32) -> (i32, i32) {
    %c0_i32 = arith.constant 0 : i32
    %c0_i32_0 = arith.constant 0 : i32
    %c0_i32_1 = arith.constant 0 : i32
    return %c0_i32, %c0_i32_0 : i32, i32
  }
  func.func @transform_21(%arg0: i32) -> (i32, i32) {
    %c0_i32 = arith.constant 0 : i32
    %c0_i32_0 = arith.constant 0 : i32
    %c0_i32_1 = arith.constant 0 : i32
    return %c0_i32, %c0_i32_0 : i32, i32
  }
  func.func @transform_22(%arg0: i32) -> (i32, i32) {
    %c0_i32 = arith.constant 0 : i32
    %c0_i32_0 = arith.constant 0 : i32
    %c0_i32_1 = arith.constant 0 : i32
    return %c0_i32, %c0_i32_0 : i32, i32
  }
  func.func @transform_23(%arg0: i32) -> (i32, i32) {
    %c0_i32 = arith.constant 0 : i32
    %c0_i32_0 = arith.constant 0 : i32
    %c0_i32_1 = arith.constant 0 : i32
    return %c0_i32, %c0_i32_0 : i32, i32
  }
  func.func @transform_24(%arg0: i32) -> (i32, i32) {
    %c0_i32 = arith.constant 0 : i32
    %c0_i32_0 = arith.constant 0 : i32
    %c0_i32_1 = arith.constant 0 : i32
    return %c0_i32, %c0_i32_0 : i32, i32
  }
  func.func @transform_25(%arg0: i32) -> (i32, i32, i32) {
    %c0_i32 = arith.constant 0 : i32
    %c0_i32_0 = arith.constant 0 : i32
    %c0_i32_1 = arith.constant 0 : i32
    %c0_i32_2 = arith.constant 0 : i32
    return %c0_i32, %c0_i32_0, %c0_i32_1 : i32, i32, i32
  }
  func.func @transform_26(%arg0: i32) -> (i32, i32) {
    %c0_i32 = arith.constant 0 : i32
    %c0_i32_0 = arith.constant 0 : i32
    %c0_i32_1 = arith.constant 0 : i32
    return %c0_i32, %c0_i32_0 : i32, i32
  }
  func.func @transform_27(%arg0: i32) -> (i32, i32) {
    %c0_i32 = arith.constant 0 : i32
    %c0_i32_0 = arith.constant 0 : i32
    %c0_i32_1 = arith.constant 0 : i32
    return %c0_i32, %c0_i32_0 : i32, i32
  }
  func.func @transform_28(%arg0: i32) -> (i32, i32) {
    %c0_i32 = arith.constant 0 : i32
    %c0_i32_0 = arith.constant 0 : i32
    %c0_i32_1 = arith.constant 0 : i32
    return %c0_i32, %c0_i32_0 : i32, i32
  }
  func.func @transform_29(%arg0: i32) -> (i32, i32) {
    %c0_i32 = arith.constant 0 : i32
    %c0_i32_0 = arith.constant 0 : i32
    %c0_i32_1 = arith.constant 0 : i32
    return %c0_i32, %c0_i32_0 : i32, i32
  }
  func.func @transform_30(%arg0: i32) -> (i32, i32) {
    %c0_i32 = arith.constant 0 : i32
    %c0_i32_0 = arith.constant 0 : i32
    %c0_i32_1 = arith.constant 0 : i32
    return %c0_i32, %c0_i32_0 : i32, i32
  }
  func.func @transform_31(%arg0: i32) -> (i32, i32) {
    %c0_i32 = arith.constant 0 : i32
    %c0_i32_0 = arith.constant 0 : i32
    %c0_i32_1 = arith.constant 0 : i32
    return %c0_i32, %c0_i32_0 : i32, i32
  }
  func.func @transform_32(%arg0: i32) -> (i32, i32) {
    %c0_i32 = arith.constant 0 : i32
    %c0_i32_0 = arith.constant 0 : i32
    %c0_i32_1 = arith.constant 0 : i32
    return %c0_i32, %c0_i32_0 : i32, i32
  }
  func.func @transform_33(%arg0: i32) -> (i32, i32) {
    %c0_i32 = arith.constant 0 : i32
    %c0_i32_0 = arith.constant 0 : i32
    %c0_i32_1 = arith.constant 0 : i32
    return %c0_i32, %c0_i32_0 : i32, i32
  }
  func.func @transform_34(%arg0: i32) -> (i32, i32) {
    %c0_i32 = arith.constant 0 : i32
    %c0_i32_0 = arith.constant 0 : i32
    %c0_i32_1 = arith.constant 0 : i32
    return %c0_i32, %c0_i32_0 : i32, i32
  }
  func.func @transform_35(%arg0: i32) -> (i32, i32) {
    %c0_i32 = arith.constant 0 : i32
    %c0_i32_0 = arith.constant 0 : i32
    %c0_i32_1 = arith.constant 0 : i32
    return %c0_i32, %c0_i32_0 : i32, i32
  }
  func.func @transform_36(%arg0: i32) -> (i32, i32) {
    %c0_i32 = arith.constant 0 : i32
    %c0_i32_0 = arith.constant 0 : i32
    %c0_i32_1 = arith.constant 0 : i32
    return %c0_i32, %c0_i32_0 : i32, i32
  }
  func.func @transform_37(%arg0: i32) -> (i32, i32) {
    %c0_i32 = arith.constant 0 : i32
    %c0_i32_0 = arith.constant 0 : i32
    %c0_i32_1 = arith.constant 0 : i32
    return %c0_i32, %c0_i32_0 : i32, i32
  }
  func.func @transform_38(%arg0: i32) -> (i32, i32) {
    %c0_i32 = arith.constant 0 : i32
    %c0_i32_0 = arith.constant 0 : i32
    %c0_i32_1 = arith.constant 0 : i32
    return %c0_i32, %c0_i32_0 : i32, i32
  }
  func.func @transform_39(%arg0: i32) -> (i32, i32) {
    %c0_i32 = arith.constant 0 : i32
    %c0_i32_0 = arith.constant 0 : i32
    %c0_i32_1 = arith.constant 0 : i32
    return %c0_i32, %c0_i32_0 : i32, i32
  }
  func.func @transform_40(%arg0: i32) -> (i32, i32) {
    %c0_i32 = arith.constant 0 : i32
    %c0_i32_0 = arith.constant 0 : i32
    %c0_i32_1 = arith.constant 0 : i32
    return %c0_i32, %c0_i32_0 : i32, i32
  }
  func.func @transform_41(%arg0: i32) -> (i32, i32) {
    %c0_i32 = arith.constant 0 : i32
    %c0_i32_0 = arith.constant 0 : i32
    %c0_i32_1 = arith.constant 0 : i32
    return %c0_i32, %c0_i32_0 : i32, i32
  }
  func.func @transform_42(%arg0: i32) -> (i32, i32) {
    %c0_i32 = arith.constant 0 : i32
    %c0_i32_0 = arith.constant 0 : i32
    %c0_i32_1 = arith.constant 0 : i32
    return %c0_i32, %c0_i32_0 : i32, i32
  }
  func.func @transform_43(%arg0: i32) -> (i32, i32) {
    %c0_i32 = arith.constant 0 : i32
    %c0_i32_0 = arith.constant 0 : i32
    %c0_i32_1 = arith.constant 0 : i32
    return %c0_i32, %c0_i32_0 : i32, i32
  }
  func.func @transform_44(%arg0: i32) -> (i32, i32) {
    %c0_i32 = arith.constant 0 : i32
    %c0_i32_0 = arith.constant 0 : i32
    %c0_i32_1 = arith.constant 0 : i32
    return %c0_i32, %c0_i32_0 : i32, i32
  }
  func.func @transform_45(%arg0: i32) -> (i32, i32) {
    %c0_i32 = arith.constant 0 : i32
    %c0_i32_0 = arith.constant 0 : i32
    %c0_i32_1 = arith.constant 0 : i32
    return %c0_i32, %c0_i32_0 : i32, i32
  }
  func.func @transform_46(%arg0: i32) -> (i32, i32) {
    %c0_i32 = arith.constant 0 : i32
    %c0_i32_0 = arith.constant 0 : i32
    %c0_i32_1 = arith.constant 0 : i32
    return %c0_i32, %c0_i32_0 : i32, i32
  }
  func.func @transform_47(%arg0: i32) -> (i32, i32) {
    %c0_i32 = arith.constant 0 : i32
    %c0_i32_0 = arith.constant 0 : i32
    %c0_i32_1 = arith.constant 0 : i32
    return %c0_i32, %c0_i32_0 : i32, i32
  }
  func.func @transform_48(%arg0: i32) -> (i32, i32) {
    %c0_i32 = arith.constant 0 : i32
    %c0_i32_0 = arith.constant 0 : i32
    %c0_i32_1 = arith.constant 0 : i32
    return %c0_i32, %c0_i32_0 : i32, i32
  }
  func.func @transform_49(%arg0: i32) -> (i32, i32, i32) {
    %c0_i32 = arith.constant 0 : i32
    %c0_i32_0 = arith.constant 0 : i32
    %c0_i32_1 = arith.constant 0 : i32
    return %arg0, %c0_i32, %c0_i32_0 : i32, i32, i32
  }
  func.func @transform_50(%arg0: i32) -> (i32, i32, i32) {
    %c0_i32 = arith.constant 0 : i32
    %c0_i32_0 = arith.constant 0 : i32
    %c0_i32_1 = arith.constant 0 : i32
    return %arg0, %c0_i32, %c0_i32_0 : i32, i32, i32
  }
}

</mosaic_0001>

<bundles_post_ra>
// kernel: transformer_forward.1
= control target key start
LH: loop header
LB: loop body
LE: loop exit
PB: predicated region body
PF: predicated region fallthrough
CT: control target
= control target key end

     0   :  { %s5016_s6 = smov 1   ;;  %s5017_s10 = smov 2   ;;  %s5809_s0 = inlined_call_operand.smem [shape: u32[51], index: -1, kind: input, shape index: {}] }
   0x1   :  { %s5081_s5 = sld [smem:[%s5809_s0]]   ;;  %s5018_s14 = smov 3  }
   0x2   :  { %s5086_s9 = sld [smem:[%s5809_s0 + %s5016_s6]]   ;;  %s5019_s18 = smov 4  }
   0x3   :  { %s5091_s13 = sld [smem:[%s5809_s0 + %s5017_s10]]   ;;  %s5020_s22 = smov 5  }
   0x4   :  { %s5096_s17 = sld [smem:[%s5809_s0 + %s5018_s14]]   ;;  %s5021_s26 = smov 6  }
   0x5   :  { %s5101_s21 = sld [smem:[%s5809_s0 + %s5019_s18]]   ;;  %s5022_s30 = smov 7  }
   0x6   :  { %s5106_s25 = sld [smem:[%s5809_s0 + %s5020_s22]]   ;;  %s5023_s4 = smov 8  }
   0x7   :  { %5839 = sst [smem:[#allocation8_spill]] %s5081_s5  ;;  %s5024_s10 = smov 9  }
   0x8   :  { %5840 = sst [smem:[#allocation9_spill]] %s5086_s9  ;;  %s5025_s15 = smov 10  }
   0x9   :  { %5841 = sst [smem:[#allocation10_spill]] %s5091_s13  ;;  %s5026_s20 = smov 11  }
   0xa   :  { %5842 = sst [smem:[#allocation11_spill]] %s5096_s17  ;;  %s5028_s1 = smov 13  }
   0xb   :  { %s5111_s29 = sld [smem:[%s5809_s0 + %s5021_s26]]   ;;  %s5027_s26 = smov 12  }
   0xc   :  { %s5116_s3 = sld [smem:[%s5809_s0 + %s5022_s30]]   ;;  %s5029_s7 = smov 14  }
   0xd   :  { %s5121_s8 = sld [smem:[%s5809_s0 + %s5023_s4]]   ;;  %s5031_s22 = smov 16  }
   0xe   :  { %s5126_s14 = sld [smem:[%s5809_s0 + %s5024_s10]]   ;;  %s5032_s28 = smov 17  }
   0xf   :  { %s5131_s19 = sld [smem:[%s5809_s0 + %s5025_s15]]   ;;  %s5030_s15 = smov 15  }
  0x10   :  { %s5136_s24 = sld [smem:[%s5809_s0 + %s5026_s20]]  }
  0x11   :  { %s5141_s30 = sld [smem:[%s5809_s0 + %s5027_s26]]  }
  0x12   :  { %5843 = sst [smem:[#allocation12_spill]] %s5116_s3 }
  0x13   :  { %5844 = sst [smem:[#allocation13_spill]] %s5121_s8 }
  0x14   :  { %5845 = sst [smem:[#allocation14_spill]] %s5126_s14 }
  0x15   :  { %5846 = sst [smem:[#allocation15_spill]] %s5131_s19 }
  0x16   :  { %s5146_s6 = sld [smem:[%s5809_s0 + %s5028_s1]]  }
  0x17   :  { %5847 = sst [smem:[#allocation16_spill]] %s5141_s30 }
  0x18   :  { %s5151_s12 = sld [smem:[%s5809_s0 + %s5029_s7]]   ;;  %s5033_s7 = smov 18  }
  0x19   :  { %s5156_s20 = sld [smem:[%s5809_s0 + %s5030_s15]]   ;;  %s5034_s15 = smov 19  }
  0x1a   :  { %s5161_s27 = sld [smem:[%s5809_s0 + %s5031_s22]]   ;;  %s5035_s22 = smov 20  }
  0x1b   :  { %s5166_s4 = sld [smem:[%s5809_s0 + %s5032_s28]]   ;;  %s5036_s28 = smov 21  }
  0x1c   :  { %5848 = sst [smem:[#allocation17_spill]] %s5146_s6 }
  0x1d   :  { %s5176_s30 = sld [smem:[%s5809_s0 + %s5034_s15]]   ;;  %s5038_s15 = smov 23  }
  0x1e   :  { %5849 = sst [smem:[#allocation18_spill]] %s5151_s12 }
  0x1f   :  { %s5171_s12 = sld [smem:[%s5809_s0 + %s5033_s7]]   ;;  %s5037_s7 = smov 22  }
  0x20   :  { %5850 = sst [smem:[#allocation19_spill]] %s5161_s27 }
  0x21   :  { %5851 = sst [smem:[#allocation20_spill]] %s5166_s4 }
  0x22   :  { %s5181_s27 = sld [smem:[%s5809_s0 + %s5035_s22]]   ;;  %s5039_s22 = smov 24  }
  0x23   :  { %5853 = sst [smem:[#allocation22_spill]] %s5176_s30 }
  0x24   :  { %s5186_s4 = sld [smem:[%s5809_s0 + %s5036_s28]]   ;;  %s5040_s28 = smov 25  }
  0x25   :  { %5852 = sst [smem:[#allocation21_spill]] %s5171_s12 }
  0x26   :  { %s5191_s12 = sld [smem:[%s5809_s0 + %s5037_s7]]   ;;  %s5041_s7 = smov 26  }
  0x27   :  { %s5196_s30 = sld [smem:[%s5809_s0 + %s5038_s15]]   ;;  %s5042_s15 = smov 27  }
  0x28   :  { %5854 = sst [smem:[#allocation23_spill]] %s5181_s27 }
  0x29   :  { %s5201_s27 = sld [smem:[%s5809_s0 + %s5039_s22]]   ;;  %s5043_s22 = smov 28  }
  0x2a   :  { %5855 = sst [smem:[#allocation24_spill]] %s5186_s4 }
  0x2b   :  { %s5206_s4 = sld [smem:[%s5809_s0 + %s5040_s28]]   ;;  %s5044_s28 = smov 29  }
  0x2c   :  { %5856 = sst [smem:[#allocation25_spill]] %s5191_s12 }
  0x2d   :  { %5857 = sst [smem:[#allocation26_spill]] %s5196_s30 }
  0x2e   :  { %s5211_s12 = sld [smem:[%s5809_s0 + %s5041_s7]]   ;;  %s5045_s7 = smov 30  }
  0x2f   :  { %5858 = sst [smem:[#allocation27_spill]] %s5201_s27 }
  0x30   :  { %s5216_s30 = sld [smem:[%s5809_s0 + %s5042_s15]]   ;;  %s5046_s15 = smov 31  }
  0x31   :  { %5859 = sst [smem:[#allocation28_spill]] %s5206_s4 }
  0x32   :  { %s5221_s27 = sld [smem:[%s5809_s0 + %s5043_s22]]   ;;  %s5047_s22 = smov 32  }
  0x33   :  { %s5226_s4 = sld [smem:[%s5809_s0 + %s5044_s28]]   ;;  %s5048_s28 = smov 33  }
  0x34   :  { %5860 = sst [smem:[#allocation29_spill]] %s5211_s12 }
  0x35   :  { %s5231_s12 = sld [smem:[%s5809_s0 + %s5045_s7]]   ;;  %s5049_s7 = smov 34  }
  0x36   :  { %5861 = sst [smem:[#allocation30_spill]] %s5216_s30 }
  0x37   :  { %s5236_s30 = sld [smem:[%s5809_s0 + %s5046_s15]]   ;;  %s5050_s15 = smov 35  }
  0x38   :  { %5862 = sst [smem:[#allocation31_spill]] %s5221_s27 }
  0x39   :  { %5863 = sst [smem:[#allocation32_spill]] %s5226_s4 }
  0x3a   :  { %s5241_s27 = sld [smem:[%s5809_s0 + %s5047_s22]]   ;;  %s5051_s22 = smov 36  }
  0x3b   :  { %5864 = sst [smem:[#allocation33_spill]] %s5231_s12 }
  0x3c   :  { %s5246_s4 = sld [smem:[%s5809_s0 + %s5048_s28]]   ;;  %s5052_s28 = smov 37  }
  0x3d   :  { %5865 = sst [smem:[#allocation34_spill]] %s5236_s30 }
  0x3e   :  { %s5251_s12 = sld [smem:[%s5809_s0 + %s5049_s7]]   ;;  %s5053_s7 = smov 38  }
  0x3f   :  { %s5256_s30 = sld [smem:[%s5809_s0 + %s5050_s15]]   ;;  %s5054_s15 = smov 39  }
  0x40   :  { %5866 = sst [smem:[#allocation35_spill]] %s5241_s27 }
  0x41   :  { %s5261_s27 = sld [smem:[%s5809_s0 + %s5051_s22]]   ;;  %s5055_s22 = smov 40  }
  0x42   :  { %5867 = sst [smem:[#allocation36_spill]] %s5246_s4 }
  0x43   :  { %s5266_s4 = sld [smem:[%s5809_s0 + %s5052_s28]]   ;;  %s5056_s28 = smov 41  }
  0x44   :  { %5868 = sst [smem:[#allocation37_spill]] %s5251_s12 }
  0x45   :  { %5869 = sst [smem:[#allocation38_spill]] %s5256_s30 }
  0x46   :  { %s5271_s12 = sld [smem:[%s5809_s0 + %s5053_s7]]   ;;  %s5057_s7 = smov 42  }
  0x47   :  { %5870 = sst [smem:[#allocation39_spill]] %s5261_s27 }
  0x48   :  { %s5276_s30 = sld [smem:[%s5809_s0 + %s5054_s15]]   ;;  %s5058_s15 = smov 43  }
  0x49   :  { %5871 = sst [smem:[#allocation40_spill]] %s5266_s4 }
  0x4a   :  { %s5281_s27 = sld [smem:[%s5809_s0 + %s5055_s22]]   ;;  %s5059_s22 = smov 44  }
  0x4b   :  { %s5286_s4 = sld [smem:[%s5809_s0 + %s5056_s28]]   ;;  %s5060_s28 = smov 45  }
  0x4c   :  { %5872 = sst [smem:[#allocation41_spill]] %s5271_s12 }
  0x4d   :  { %s5291_s12 = sld [smem:[%s5809_s0 + %s5057_s7]]   ;;  %s5061_s7 = smov 46  }
  0x4e   :  { %5873 = sst [smem:[#allocation42_spill]] %s5276_s30 }
  0x4f   :  { %s5296_s30 = sld [smem:[%s5809_s0 + %s5058_s15]]   ;;  %s5062_s15 = smov 47  }
  0x50   :  { %5874 = sst [smem:[#allocation43_spill]] %s5281_s27 }
  0x51   :  { %5875 = sst [smem:[#allocation44_spill]] %s5286_s4 }
  0x52   :  { %s5301_s27 = sld [smem:[%s5809_s0 + %s5059_s22]]   ;;  %s5063_s22 = smov 48  }
  0x53   :  { %5876 = sst [smem:[#allocation45_spill]] %s5291_s12 }
  0x54   :  { %s5306_s4 = sld [smem:[%s5809_s0 + %s5060_s28]]   ;;  %s5064_s28 = smov 49  }
  0x55   :  { %5877 = sst [smem:[#allocation46_spill]] %s5296_s30 }
  0x56   :  { %s5311_s12 = sld [smem:[%s5809_s0 + %s5061_s7]]   ;;  %s5065_s7 = smov 50  }
  0x57   :  { %s5316_s30 = sld [smem:[%s5809_s0 + %s5062_s15]]  }
  0x58   :  { %5878 = sst [smem:[#allocation47_spill]] %s5301_s27 }
  0x59   :  { %s5321_s27 = sld [smem:[%s5809_s0 + %s5063_s22]]  }
  0x5a   :  { %5879 = sst [smem:[#allocation48_spill]] %s5306_s4 }
  0x5b   :  { %s5326_s4 = sld [smem:[%s5809_s0 + %s5064_s28]]  }
  0x5c   :  { %5880 = sst [smem:[#allocation49_spill]] %s5311_s12 }
  0x5d   :  { %s5331_s12 = sld [smem:[%s5809_s0 + %s5065_s7]]  }
  0x5e   :  { %107 = vsyncpa [#allocation3], 0 }
  0x5f   :  { %109 = vsyncpa [#allocation3 + $0x1], 0 }
  0x60   :  { %110 = vsyncpa [#allocation5], 0 }
  0x61   :  { %112 = vsyncpa [#allocation5 + $0x1], 0  ;;  %s5333_s15 = smov 0   ;;  %s5335_s16 = smov 0  }
  0x62   :  { %s5337_s18 = smov 0   ;;  %s5339_s22 = smov 0  }
  0x63 LB: > { %s5881_s17 = sld [smem:[#allocation11_spill]]  ;;  %s5354_s0 = sadd.s32 4294967295, %s5014_s22   ;;  %s5014_s22 = sphi %s5339_s22, %s5932_s22   ;;  %s5010_s18 = sphi %s5337_s18, %s5931_s18   ;;  %s5006_s16 = sphi %s5335_s16, %s5930_s16   ;;  %s5002_s15 = sphi %s5333_s15, %s5929_s15  }
  0x64   : > { %s5882_s14 = sld [smem:[#allocation14_spill]]  ;;  %s4250_s23 = sadd.s32 4294967294, %s5014_s22  }
  0x65   : > { %s5883_s6 = sld [smem:[#allocation17_spill]]  ;;  %s5358_s26 = sadd.s32 1, %s5014_s22  }
  0x66   : > { %s5884_s3 = sld [smem:[#allocation12_spill]]  ;;  %s1159_s28 = sadd.s32 1, %s5010_s18 }
  0x67   : > { %s1156_s1 = ssub.s32 %s5014_s22, %s5358_s26  ;;  %p1169_p0 = scmp.ne.s32.totalorder %s5010_s18, %s5006_s16 }
  0x68   : > { %p1157_p1 = scmp.eq.s32.totalorder %s1156_s1, 0  ;;  %p1170_p2 = scmp.eq.s32.totalorder %s5354_s0, 1 }
  0x69   : > { %p1175_p3 = scmp.ne.s32.totalorder %s5006_s16, %s5002_s15  ;;  %p1176_p4 = scmp.eq.s32.totalorder %s4250_s23, 1 }
  0x6a   : > { %s5369_s2 = scalar_select %p1157_p1, %s5010_s18, %s1159_s28  }
  0x6b   : > { %p5371_p5 = por %p1170_p2, %p1169_p0  ;;  %p5375_p6 = por %p1176_p4, %p1175_p3 }
  0x6c   : > { %p4253_p7 = scmp.ge.s32.totalorder %s5014_s22, 1  ;;  %p1371_p8 = scmp.lt.s32.totalorder %s5014_s22, 3 }
  0x6e   : > { %p1372_p9 = pnand %p4253_p7, %p1371_p8 }
  0x6f   : > { %s5887_s9 = sld [smem:[#allocation9_spill]] (!%p1372_p9)  ;;  %p1491_p10 = scmp.lt.s32.totalorder (!%p1372_p9), %s5354_s0, 1 }
  0x70   : > { %1375 = sbr.rel (%p1372_p9) target bundleno = 6607 (0x19cf), region = 216  ;;  %s5888_s5 = sld [smem:[#allocation8_spill]] (!%p1372_p9) }
  0x71   : > { %s5889_s13 = sld [smem:[#allocation10_spill]] (!%p1372_p9)  ;;  %s5822_s1 = smov (!%p1372_p9), 120  }
  0x72   : > { %s5890_s8 = sld [smem:[#allocation13_spill]] (!%p1372_p9) }
  0x73   : > { %s5891_s19 = sld [smem:[#allocation15_spill]] (!%p1372_p9) }
  0x75   : > { %v1497_v0 = vld [vmem:[%s5887_s9] sm:$0x7f]  ;;  %vm1509_vm0 = vcmask 1046528   ;;  %v5066_v1 = vmov 0.0   ;;  %vm5067_vm1 = vmmov 0   ;;  %s1492_s11 = scalar_select %p1491_p10, %s5354_s0, 1 }
  0x76   : > { %4460 = vmatprep.subr.mxu1 %v5066_v1  ;;  %4462 = vmatprep.mubr.msk.f32.mxu1 %vm5067_vm1, %v5066_v1  ;;  %v4841_v2 = vld [vmem:[%s5106_s25 + $0x8] sm:$0xff]   ;;  %vm1505_vm2 = vcmask 56320   ;;  %v4842_v5 = vld [vmem:[%s5881_s17] sm:$0xff]   ;;  %vm1607_vm3 = vcmask 261120   ;;  %vm1824_vm4 = vcmask 64512   ;;  %vm2060_vm5 = vcmask 1043456  }
  0x77   : > { %4461 = vmatpush3.msk.msra.mxu1 %vm1509_vm0, %v1497_v0  ;;  %4473 = vmatprep.subr.bf16.mxu0 %v5066_v1  ;;  %s4254_s23 = sshll.u32 %s1492_s11, 3  ;;  %v4840_v3 = vld [vmem:[%s5881_s17 + $0x8] sm:$0xff]   ;;  %v4843_v6 = vld [vmem:[%s5106_s25] sm:$0xff]   ;;  %s5824_s11 = smov 112   ;;  %vm2584_vm6 = vcmask 523264   ;;  %vm3735_vm7 = vcmask 253952  }
  0x78   : > { %4465 = vmatprep.subr.bf16.mxu1 %v5066_v1  ;;  %4477 = vmatprep.mubr.msk.bf16.mxu0 %vm5067_vm1, %v5066_v1  ;;  %s1494_s28 = scalar_lea.vmem %s5888_s5, %s4254_s23  ;;  %v4255_v7 = vld [vmem:[%s5889_s13] ss:$0 sm:$0xff]  ;;  %v4844_v11 = vld [vmem:[%s5884_s3 + $0x8] sm:$0xff]   ;;  %s5820_s23 = smov 104   ;;  %vm3800_vm8 = vcmask 516096  }
  0x79   : > { %4474 = vmatpush3.bf16.msra.mxu0 %v4841_v2  ;;  %v1496_v4 = vld [vmem:[%s1494_s28] sm:$0xff]  ;;  %s5892_s28 = sld [smem:[#allocation16_spill]] }
  0x7a   : > { %4475 = vmatprep.subr.bf16.mxu0 %v5066_v1  ;;  %4463 = vmatmul.mubr.msk.f32.vlgmr.msra.gmra.mxu1 %vm1505_vm2, %v1496_v4  ;;  %v4845_v13 = vld [vmem:[%s5884_s3] sm:$0xff]   ;;  %s5899_s3 = sld [smem:[#allocation24_spill]] }
  0x7b   : > { %4466 = vmatpush3.bf16.msra.mxu1 %v4840_v3  ;;  %4469 = vmatprep.mubr.msk.bf16.mxu1 %vm5067_vm1, %v5066_v1  ;;  %v4258_v14 = vld [vmem:[%s5101_s21] ss:$0 sm:$0xff]  ;;  %s5900_s5 = sld [smem:[#allocation23_spill]] }
  0x7c   : > { %4467 = vmatprep.subr.bf16.mxu1 %v5066_v1  ;;  %v4262_v15 = vld [vmem:[%s5111_s29] ss:$0 sm:$0xff] }
  0x7d   : > { %4476 = vmatpush3.bf16.msra.mxu0 %v4843_v6  ;;  %v4266_v38 = vld [vmem:[%s5890_s8] ss:$0 sm:$0xff]  ;;  %s5919_s8 = sld [smem:[#allocation47_spill]] }
  0x7e   : > { %4489 = vmatprep.subr.bf16.mxu0 %v5066_v1 }
  0x7f   : > { %4468 = vmatpush3.bf16.msra.mxu1 %v4842_v5 }
  0x80   : > { %4481 = vmatprep.subr.bf16.mxu1 %v5066_v1 }
 0x13a   : > { %v1579_v8 = vpop.f32.mrf.mxu1 }
 0x13b   : > { %v5403_v9 = vadd.f32 %v4255_v7, %v1579_v8 }
 0x13c   : > { %v4464_v10 = vpop.f32.mrf.mxu1 }
 0x13d   : > { %v1583_v12 = vpack.c.bf16 %v5403_v9, %v5403_v9 }
 0x13f   : > { %4470 = vmatmul.mubr.msk.bf16.vlgmr.msra.gmra.mxu1 %vm1607_vm3, %v1583_v12  ;;  %4478 = vmatmul.mubr.msk.bf16.vlgmr.msra.gmra.mxu0 %vm1607_vm3, %v1583_v12 }
 0x140   : > { %4482 = vmatpush3.bf16.msra.mxu1 %v4844_v11  ;;  %4485 = vmatprep.mubr.msk.bf16.mxu1 %vm5067_vm1, %v5066_v1 }
 0x141   : > { %4483 = vmatprep.subr.bf16.mxu1 %v5066_v1  ;;  %4491 = vmatprep.mubr.msk.bf16.mxu0 %vm5067_vm1, %v5066_v1 }
 0x144   : > { %4484 = vmatpush3.bf16.msra.mxu1 %v4845_v13 }
 0x145   : > { %4495 = vmatprep.subr.bf16.mxu1 %v5066_v1 }
 0x147   : > { %4486 = vmatmul.mubr.msk.bf16.vlgmr.msra.gmra.mxu1 %vm1607_vm3, %v1583_v12 }
 0x148   : > { %4497 = vmatprep.mubr.msk.bf16.mxu1 %vm5067_vm1, %v5066_v1 }
 0x1ff   : > { %v1645_v16 = vpop.f32.mrf.mxu1  ;;  %v1708_v17 = vpop.f32.mrf.mxu0 }
 0x200   : > { %v1646_v18 = vadd.f32 %v4258_v14, %v1645_v16  ;;  %v1709_v19 = vadd.f32 %v4262_v15, %v1708_v17 }
 0x201   : > { %v4471_v20 = vpop.f32.mrf.mxu1  ;;  %v4479_v21 = vpop.f32.mrf.mxu0 }
 0x202   : > { %v1777_v22 = vmul.f32 0.35355338, %v1646_v18  ;;  %1797 = vrot.lane.b32.xlu0 %v1709_v19, %s5822_s1  ;;  %v1806_v23 = vpack.c.bf16 %v1709_v19, %v1709_v19 }
 0x203   : > { %v1648_v24 = vpop.f32.mrf.mxu1  ;;  %v1711_v25 = vpop.f32.mrf.mxu0 }
 0x204   : > { %1783 = vrot.lane.b32.xlu1 %v1777_v22, %s5822_s1  ;;  %v1829_v26 = vsel %vm1824_vm4, %v1806_v23, 0  ;;  %v1792_v31 = vpack.c.bf16 %v1777_v22, %v1777_v22 }
 0x205   : > { %v4472_v27 = vpop.f32.mrf.mxu1  ;;  %v4480_v28 = vpop.f32.mrf.mxu0  ;;  %4490 = vmatpush3.bf16.xpose.msra.mxu0 %v1829_v26 }
 0x206   : > { %1800 = vrot.lane.b32.xlu0 %v1709_v19, %s5824_s11  ;;  %4501 = vmatprep.subr.bf16.mxu0 %v5066_v1 }
 0x207   : > { %v1771_v29 = vpop.f32.mrf.mxu1 }
 0x208   : > { %1803 = vrot.lane.b32.xlu1 %v1709_v19, %s5820_s23  ;;  %v5436_v42 = vadd.f32 %v4266_v38, %v1771_v29 }
 0x209   : > { %v4487_v30 = vpop.f32.mrf.mxu1 }
 0x20a   : > { %1786 = vrot.lane.b32.xlu0 %v1777_v22, %s5824_s11  ;;  %v1820_v48 = vpack.c.bf16 %v5436_v42, %v5436_v42 }
 0x20b   : > { %v1774_v32 = vpop.f32.mrf.mxu1 }
 0x20c   : > { %1789 = vrot.lane.b32.xlu1 %v1777_v22, %s5820_s23  ;;  %4492 = vmatmul.mubr.msk.bf16.vlgmr.msra.gmra.mxu0 %vm1824_vm4, %v1792_v31  ;;  %v2062_v51 = vsel %vm2060_vm5, %v1820_v48, 0 }
 0x20d   : > { %v4488_v33 = vpop.f32.mrf.mxu1  ;;  %4503 = vmatprep.mubr.msk.bf16.mxu0 %vm5067_vm1, %v5066_v1 }
 0x274   : > { %v1798_v34 = vpop.permute.xlu0 %1797 }
 0x275   : > { %v1807_v35 = vpack.c.bf16 %v1798_v34, %v1798_v34 }
 0x276   : > { %v1784_v36 = vpop.permute.xlu1 %1783 }
 0x277   : > { %v1875_v37 = vsel %vm1824_vm4, %v1807_v35, 0  ;;  %v1793_v45 = vpack.c.bf16 %v1784_v36, %v1784_v36 }
 0x278   : > { %v1801_v39 = vpop.permute.xlu0 %1800  ;;  %4496 = vmatpush3.bf16.xpose.msra.mxu1 %v1875_v37 }
 0x279   : > { %v1808_v40 = vpack.c.bf16 %v1801_v39, %v1801_v39  ;;  %4507 = vmatprep.subr.bf16.mxu1 %v5066_v1 }
 0x27a   : > { %v1804_v41 = vpop.permute.xlu1 %1803 }
 0x27b   : > { %v1921_v43 = vsel %vm1824_vm4, %v1808_v40, 0  ;;  %v1809_v44 = vpack.c.bf16 %v1804_v41, %v1804_v41 }
 0x27c   : > { %4502 = vmatpush3.bf16.xpose.msra.mxu0 %v1921_v43  ;;  %v1787_v46 = vpop.permute.xlu0 %1786 }
 0x27d   : > { %4513 = vmatprep.subr.bf16.mxu0 %v5066_v1  ;;  %v1967_v47 = vsel %vm1824_vm4, %v1809_v44, 0  ;;  %v1794_v49 = vpack.c.bf16 %v1787_v46, %v1787_v46 }
 0x27e   : > { %v1790_v50 = vpop.permute.xlu1 %1789 }
 0x27f   : > { %4498 = vmatmul.mubr.msk.bf16.vlgmr.msra.gmra.mxu1 %vm1824_vm4, %v1793_v45  ;;  %v1795_v52 = vpack.c.bf16 %v1790_v50, %v1790_v50  ;;  %v1778_v50 = vld [vmem:[%s5882_s14] sm:$0xf] }
 0x280   : > { %4508 = vmatpush3.bf16.xpose.msra.mxu1 %v1967_v47  ;;  %4509 = vmatprep.mubr.msk.bf16.mxu1 %vm5067_vm1, %v5066_v1 }
 0x281   : > { %4519 = vmatprep.subr.bf16.mxu1 %v5066_v1 }
 0x283   : > { %4504 = vmatmul.mubr.msk.bf16.vlgmr.msra.gmra.mxu0 %vm1824_vm4, %v1794_v49 }
 0x284   : > { %4514 = vmatpush3.bf16.msra.mxu0 %v2062_v51  ;;  %4515 = vmatprep.mubr.msk.bf16.mxu0 %vm5067_vm1, %v5066_v1 }
 0x285   : > { %4525 = vmatprep.subr.bf16.mxu0 %v5066_v1 }
 0x287   : > { %4510 = vmatmul.mubr.msk.bf16.vlgmr.msra.gmra.mxu1 %vm1824_vm4, %v1795_v52 }
 0x288   : > { %4521 = vmatprep.mubr.msk.bf16.mxu1 %vm5067_vm1, %v5066_v1 }
 0x2cc   : > { %v1865_v53 = vpop.f32.mrf.mxu0 }
 0x2cd   : > { %v2009_v54 = vsel %vm1824_vm4, %v1865_v53, -inf }
 0x2ce   : > { %2010 = vmax.xlane.f32.xlu0 %v2009_v54  ;;  %v4493_v55 = vpop.f32.mrf.mxu0  ;;  %v2250_v54 = vsel %vm2060_vm5, %v1778_v50, 0 }
 0x2d0   : > { %v1868_v56 = vpop.f32.mrf.mxu0 }
 0x2d1   : > { %v1779_v56 = vld [vmem:[%s5882_s14 + $0x4] sm:$0xf] }
 0x2d2   : > { %v4494_v57 = vpop.f32.mrf.mxu0 }
 0x33f   : > { %v1911_v58 = vpop.f32.mrf.mxu1 }
 0x340   : > { %v2012_v59 = vsel %vm1824_vm4, %v1911_v58, -inf }
 0x341   : > { %2013 = vmax.xlane.f32.xlu1 %v2012_v59  ;;  %v4499_v60 = vpop.f32.mrf.mxu1  ;;  %v2296_v59 = vsel %vm2060_vm5, %v1779_v56, 0  ;;  %v4849_v56 = vld [vmem:[%s5156_s20 + $0x10] sm:$0xff]  }
 0x342   : > { %v1780_v60 = vld [vmem:[%s5882_s14 + $0x8] sm:$0xf] }
 0x343   : > { %v1914_v61 = vpop.f32.mrf.mxu1  ;;  %v1957_v62 = vpop.f32.mrf.mxu0 }
 0x344   : > { %v2015_v63 = vsel %vm1824_vm4, %v1957_v62, -inf }
 0x345   : > { %2016 = vmax.xlane.f32.xlu0 %v2015_v63  ;;  %v4500_v0 = vpop.f32.mrf.mxu1  ;;  %v4505_v2 = vpop.f32.mrf.mxu0  ;;  %v2342_v63 = vsel %vm2060_vm5, %v1780_v60, 0 }
 0x347   : > { %v1960_v3 = vpop.f32.mrf.mxu0  ;;  %v2003_v4 = vpop.f32.mrf.mxu1 }
 0x348   : > { %v2018_v5 = vsel %vm1824_vm4, %v2003_v4, -inf }
 0x349   : > { %v4506_v6 = vpop.f32.mrf.mxu0  ;;  %2019 = vmax.xlane.f32.xlu0 %v2018_v5  ;;  %v4511_v7 = vpop.f32.mrf.mxu1 }
 0x34b   : > { %v2006_v8 = vpop.f32.mrf.mxu1 }
 0x34d   : > { %v4512_v10 = vpop.f32.mrf.mxu1 }
 0x352   : > { %1811 = vrot.lane.b32.xlu1 %v5436_v42, %s5822_s1  ;;  %s5894_s1 = sld [smem:[#allocation19_spill]] }
 0x357   : > { %v2011_v11 = vpop.xlane.xlu0 %2010 }
 0x358   : > { %v2021_v12 = vsub.f32 %v1865_v53, %v2011_v11 }
 0x35a   : > { %v2025_v13 = vmul.f32 1.442695, %v2021_v12 }
 0x35c   : > { %4878 = vpow2.f32 %v2025_v13 }
 0x369   : > { %v4879_v14 = vpop.eup %4878 }
 0x36a   : > { %v2033_v15 = vsel %vm1824_vm4, %v4879_v14, 0.0 }
 0x376   : > { %2034 = vadd.xlane.f32.xlu1 %v2033_v15 }
 0x3ca   : > { %v2014_v16 = vpop.xlane.xlu1 %2013 }
 0x3cb   : > { %v2022_v17 = vsub.f32 %v1911_v58, %v2014_v16 }
 0x3cd   : > { %v2027_v18 = vmul.f32 1.442695, %v2022_v17 }
 0x3ce   : > { %v2017_v19 = vpop.xlane.xlu0 %2016  ;;  %v1812_v20 = vpop.permute.xlu1 %1811 }
 0x3cf   : > { %4880 = vpow2.f32 %v2027_v18  ;;  %v2023_v21 = vsub.f32 %v1957_v62, %v2017_v19  ;;  %v1821_v22 = vpack.c.bf16 %v1812_v20, %v1812_v20 }
 0x3d1   : > { %v2029_v23 = vmul.f32 1.442695, %v2023_v21  ;;  %v2108_v24 = vsel %vm2060_vm5, %v1821_v22, 0 }
 0x3d2   : > { %4520 = vmatpush3.bf16.msra.mxu1 %v2108_v24  ;;  %v2020_v25 = vpop.xlane.xlu0 %2019 }
 0x3d3   : > { %4882 = vpow2.f32 %v2029_v23  ;;  %v2024_v26 = vsub.f32 %v2003_v4, %v2020_v25  ;;  %4531 = vmatprep.subr.bf16.mxu1 %v5066_v1  ;;  %v1781_v4 = vld [vmem:[%s5882_s14 + $0xc] sm:$0xf] }
 0x3d4   : > { %v2388_v7 = vsel %vm2060_vm5, %v1781_v4, 0  ;;  %v4850_v4 = vld [vmem:[%s5156_s20 + $0x8] sm:$0xff]  }
 0x3d5   : > { %v2031_v27 = vmul.f32 1.442695, %v2024_v26 }
 0x3d7   : > { %4884 = vpow2.f32 %v2031_v27 }
 0x3dc   : > { %v4881_v28 = vpop.eup %4880 }
 0x3dd   : > { %v2036_v29 = vsel %vm1824_vm4, %v4881_v28, 0.0 }
 0x3de   : > { %2037 = vadd.xlane.f32.xlu0 %v2036_v29 }
 0x3e0   : > { %v4883_v30 = vpop.eup %4882 }
 0x3e1   : > { %v2039_v31 = vsel %vm1824_vm4, %v4883_v30, 0.0 }
 0x3e2   : > { %2040 = vadd.xlane.f32.xlu1 %v2039_v31 }
 0x3e4   : > { %v4885_v32 = vpop.eup %4884 }
 0x3e5   : > { %v2042_v33 = vsel %vm1824_vm4, %v4885_v32, 0.0 }
 0x3e6   : > { %2043 = vadd.xlane.f32.xlu0 %v2042_v33 }
 0x3f3   : > { %1817 = vrot.lane.b32.xlu1 %v5436_v42, %s5820_s23  ;;  %s5893_s23 = sld [smem:[#allocation18_spill]] }
 0x3fc   : > { %1814 = vrot.lane.b32.xlu0 %v5436_v42, %s5824_s11  ;;  %s5896_s11 = sld [smem:[#allocation26_spill]] }
 0x3ff   : > { %v2035_v34 = vpop.xlane.xlu1 %2034 }
 0x400   : > { %4886 = vrcp.f32 %v2035_v34 }
 0x40d   : > { %v4887_v35 = vpop.eup %4886 }
 0x40e   : > { %v2049_v36 = vmul.f32 %v4887_v35, %v4879_v14 }
 0x410   : > { %v2053_v37 = vpack.c.bf16 %v2049_v36, %v2049_v36 }
 0x412   : > { %4516 = vmatmul.mubr.msk.bf16.vlgmr.msra.gmra.mxu0 %vm1824_vm4, %v2053_v37 }
 0x413   : > { %4527 = vmatprep.mubr.msk.bf16.mxu0 %vm5067_vm1, %v5066_v1 }
 0x467   : > { %v2038_v38 = vpop.xlane.xlu0 %2037 }
 0x468   : > { %4888 = vrcp.f32 %v2038_v38 }
 0x46b   : > { %v2041_v39 = vpop.xlane.xlu1 %2040 }
 0x46c   : > { %4890 = vrcp.f32 %v2041_v39 }
 0x46f   : > { %v2044_v40 = vpop.xlane.xlu0 %2043  ;;  %v1818_v41 = vpop.permute.xlu1 %1817 }
 0x470   : > { %4892 = vrcp.f32 %v2044_v40  ;;  %v1823_v45 = vpack.c.bf16 %v1818_v41, %v1818_v41  ;;  %v4282_v40 = vld [vmem:[%s5891_s19] ss:$0 sm:$0xff] }
 0x472   : > { %v2200_v51 = vsel %vm2060_vm5, %v1823_v45, 0 }
 0x473   : > { %v1815_v43 = vpop.permute.xlu0 %1814 }
 0x474   : > { %v1822_v42 = vpack.c.bf16 %v1815_v43, %v1815_v43 }
 0x475   : > { %v4889_v44 = vpop.eup %4888 }
 0x476   : > { %v2154_v46 = vsel %vm2060_vm5, %v1822_v42, 0  ;;  %v2050_v47 = vmul.f32 %v4889_v44, %v4881_v28 }
 0x477   : > { %4526 = vmatpush3.bf16.msra.mxu0 %v2154_v46 }
 0x478   : > { %v2054_v48 = vpack.c.bf16 %v2050_v47, %v2050_v47  ;;  %4537 = vmatprep.subr.bf16.mxu0 %v5066_v1 }
 0x479   : > { %v4891_v49 = vpop.eup %4890 }
 0x47a   : > { %4522 = vmatmul.mubr.msk.bf16.vlgmr.msra.gmra.mxu1 %vm1824_vm4, %v2054_v48  ;;  %v2051_v52 = vmul.f32 %v4891_v49, %v4883_v30 }
 0x47b   : > { %4532 = vmatpush3.bf16.msra.mxu1 %v2200_v51  ;;  %4533 = vmatprep.mubr.msk.bf16.mxu1 %vm5067_vm1, %v5066_v1 }
 0x47c   : > { %v2055_v53 = vpack.c.bf16 %v2051_v52, %v2051_v52  ;;  %4543 = vmatprep.subr.bf16.mxu1 %v5066_v1 }
 0x47d   : > { %v4893_v55 = vpop.eup %4892 }
 0x47e   : > { %4528 = vmatmul.mubr.msk.bf16.vlgmr.msra.gmra.mxu0 %vm1824_vm4, %v2055_v53  ;;  %v2052_v57 = vmul.f32 %v4893_v55, %v4885_v32  ;;  %v4847_v55 = vld [vmem:[%s5883_s6] sm:$0xff]  }
 0x47f   : > { %4538 = vmatpush3.bf16.msra.mxu0 %v2250_v54  ;;  %4539 = vmatprep.mubr.msk.bf16.mxu0 %vm5067_vm1, %v5066_v1  ;;  %v4846_v54 = vld [vmem:[%s5883_s6 + $0x8] sm:$0xff]   ;;  %s5904_s6 = sld [smem:[#allocation27_spill]] }
 0x480   : > { %v2056_v58 = vpack.c.bf16 %v2052_v57, %v2052_v57  ;;  %4549 = vmatprep.subr.bf16.mxu0 %v5066_v1 }
 0x482   : > { %4534 = vmatmul.mubr.msk.bf16.vlgmr.msra.gmra.mxu1 %vm1824_vm4, %v2056_v58 }
 0x483   : > { %4544 = vmatpush3.bf16.msra.mxu1 %v2296_v59  ;;  %4545 = vmatprep.mubr.msk.bf16.mxu1 %vm5067_vm1, %v5066_v1 }
 0x484   : > { %4555 = vmatprep.subr.bf16.mxu1 %v5066_v1 }
 0x4d2   : > { %v2098_v61 = vpop.f32.mrf.mxu0 }
 0x4d3   : > { %v2242_v62 = vpack.c.bf16 %v2098_v61, %v2098_v61  ;;  %v4283_v61 = vld [vmem:[%s5136_s24] ss:$0 sm:$0xff] }
 0x4d4   : > { %v4517_v0 = vpop.f32.mrf.mxu0 }
 0x4d5   : > { %4540 = vmatmul.mubr.msk.bf16.vlgmr.msra.gmra.mxu0 %vm1824_vm4, %v2242_v62 }
 0x4d6   : > { %v2101_v2 = vpop.f32.mrf.mxu0  ;;  %4550 = vmatpush3.bf16.msra.mxu0 %v2342_v63  ;;  %4551 = vmatprep.mubr.msk.bf16.mxu0 %vm5067_vm1, %v5066_v1  ;;  %v4284_v63 = vld [vmem:[%s5892_s28] ss:$0 sm:$0xff]  ;;  %s5895_s28 = sld [smem:[#allocation22_spill]] }
 0x4d7   : > { %4561 = vmatprep.subr.bf16.mxu0 %v5066_v1 }
 0x4d8   : > { %v4518_v3 = vpop.f32.mrf.mxu0 }
 0x53a   : > { %v2144_v5 = vpop.f32.mrf.mxu1 }
 0x53b   : > { %v2243_v6 = vpack.c.bf16 %v2144_v5, %v2144_v5  ;;  %v4851_v5 = vld [vmem:[%s5156_s20] sm:$0xff]  }
 0x53c   : > { %v4523_v8 = vpop.f32.mrf.mxu1 }
 0x53d   : > { %4546 = vmatmul.mubr.msk.bf16.vlgmr.msra.gmra.mxu1 %vm1824_vm4, %v2243_v6  ;;  %v4285_v6 = vld [vmem:[%s5893_s23] ss:$0 sm:$0xff]  ;;  %s5898_s23 = sld [smem:[#allocation21_spill]] }
 0x53e   : > { %v2147_v10 = vpop.f32.mrf.mxu1  ;;  %v2190_v11 = vpop.f32.mrf.mxu0  ;;  %4556 = vmatpush3.bf16.msra.mxu1 %v2388_v7  ;;  %4557 = vmatprep.mubr.msk.bf16.mxu1 %vm5067_vm1, %v5066_v1 }
 0x53f   : > { %v2244_v12 = vpack.c.bf16 %v2190_v11, %v2190_v11  ;;  %4569 = vmatprep.subr.bf16.mxu1 %v5066_v1 }
 0x540   : > { %v4524_v13 = vpop.f32.mrf.mxu1  ;;  %v4529_v14 = vpop.f32.mrf.mxu0 }
 0x541   : > { %4552 = vmatmul.mubr.msk.bf16.vlgmr.msra.gmra.mxu0 %vm1824_vm4, %v2244_v12 }
 0x542   : > { %v2193_v15 = vpop.f32.mrf.mxu0  ;;  %v2236_v16 = vpop.f32.mrf.mxu1  ;;  %4565 = vmatprep.mubr.msk.bf16.mxu0 %vm5067_vm1, %v5066_v1  ;;  %4562 = vmatpush3.bf16.msra.mxu0 %v4846_v54 }
 0x543   : > { %v2245_v17 = vpack.c.bf16 %v2236_v16, %v2236_v16  ;;  %4563 = vmatprep.subr.bf16.mxu0 %v5066_v1  ;;  %v4289_v15 = vld [vmem:[%s5894_s1] ss:$0 sm:$0xff]  ;;  %s5897_s1 = sld [smem:[#allocation20_spill]] }
 0x544   : > { %v4530_v18 = vpop.f32.mrf.mxu0  ;;  %v4535_v19 = vpop.f32.mrf.mxu1 }
 0x545   : > { %4558 = vmatmul.mubr.msk.bf16.vlgmr.msra.gmra.mxu1 %vm1824_vm4, %v2245_v17 }
 0x546   : > { %v2239_v20 = vpop.f32.mrf.mxu1  ;;  %4577 = vmatprep.mubr.msk.bf16.mxu1 %vm5067_vm1, %v5066_v1  ;;  %4564 = vmatpush3.bf16.msra.mxu0 %v4847_v55 }
 0x547   : > { %4581 = vmatprep.subr.bf16.mxu0 %v5066_v1 }
 0x548   : > { %v4536_v21 = vpop.f32.mrf.mxu1 }
 0x595   : > { %v2286_v22 = vpop.f32.mrf.mxu0 }
 0x596   : > { %v2430_v31 = vsel %vm1607_vm3, %v2286_v22, 0.0 }
 0x597   : > { %v4541_v23 = vpop.f32.mrf.mxu0 }
 0x599   : > { %v2289_v24 = vpop.f32.mrf.mxu0 }
 0x59b   : > { %v4542_v25 = vpop.f32.mrf.mxu0 }
 0x5fd   : > { %v2332_v26 = vpop.f32.mrf.mxu1 }
 0x5fe   : > { %v2431_v28 = vsel %vm1607_vm3, %v2332_v26, 0.0 }
 0x5ff   : > { %v4547_v27 = vpop.f32.mrf.mxu1  ;;  %v2432_v33 = vadd.f32 %v2431_v28, %v2430_v31  ;;  %v4852_v28 = vld [vmem:[%s5895_s28 + $0x8] sm:$0xff]   ;;  %v4855_v31 = vld [vmem:[%s5896_s11] sm:$0xff]  }
 0x601   : > { %v2335_v29 = vpop.f32.mrf.mxu1  ;;  %v2378_v30 = vpop.f32.mrf.mxu0 }
 0x602   : > { %v2433_v32 = vsel %vm1607_vm3, %v2378_v30, 0.0  ;;  %v4853_v29 = vld [vmem:[%s5896_s11 + $0x8] sm:$0xff]   ;;  %v4854_v30 = vld [vmem:[%s5895_s28] sm:$0xff]  }
 0x603   : > { %v4548_v34 = vpop.f32.mrf.mxu1  ;;  %v4553_v35 = vpop.f32.mrf.mxu0  ;;  %v2434_v36 = vadd.f32 %v2433_v32, %v2432_v33 }
 0x605   : > { %v2381_v37 = vpop.f32.mrf.mxu0  ;;  %v2424_v38 = vpop.f32.mrf.mxu1 }
 0x606   : > { %v2435_v39 = vsel %vm1607_vm3, %v2424_v38, 0.0  ;;  %v4296_v38 = vld [vmem:[%s5898_s23] ss:$0 sm:$0xff]  ;;  %s5902_s23 = smov 112  }
 0x607   : > { %v2436_v41 = vadd.f32 %v2435_v39, %v2434_v36  ;;  %v4554_v43 = vpop.f32.mrf.mxu0  ;;  %v4559_v42 = vpop.f32.mrf.mxu1  ;;  %v4295_v36 = vld [vmem:[%s5897_s1] ss:$0 sm:$0xff]  ;;  %s5901_s1 = sld [smem:[#allocation25_spill]] }
 0x608   : > { %v4857_v42 = vld [vmem:[%s5899_s3] sm:$0xff]  }
 0x609   : > { %v2444_v44 = vadd.f32 %v4282_v40, %v2436_v41  ;;  %v2427_v45 = vpop.f32.mrf.mxu1  ;;  %v4856_v41 = vld [vmem:[%s5899_s3 + $0x8] sm:$0xff]   ;;  %s5903_s3 = smov 120  }
 0x60b   : > { %v4560_v46 = vpop.f32.mrf.mxu1  ;;  %v2445_v47 = vadd.f32 %v2444_v44, %v5403_v9  ;;  %v4848_v9 = vld [vmem:[%s5156_s20 + $0x18] sm:$0xff]  }
 0x60c   : > { %4570 = vmatpush3.bf16.msra.mxu1 %v4848_v9 }
 0x60d   : > { %v2448_v48 = vsel %vm1607_vm3, %v2445_v47, 0.0  ;;  %4571 = vmatprep.subr.bf16.mxu1 %v5066_v1 }
 0x60e   : > { %2449 = vadd.xlane.f32.xlu1 %v2448_v48 }
 0x610   : > { %4572 = vmatpush3.bf16.msra.mxu1 %v4849_v56 }
 0x611   : > { %4573 = vmatprep.subr.bf16.mxu1 %v5066_v1 }
 0x614   : > { %4574 = vmatpush3.bf16.msra.mxu1 %v4850_v4 }
 0x615   : > { %4575 = vmatprep.subr.bf16.mxu1 %v5066_v1 }
 0x618   : > { %4576 = vmatpush3.bf16.msra.mxu1 %v4851_v5 }
 0x619   : > { %4597 = vmatprep.subr.bf16.mxu1 %v5066_v1 }
 0x697   : > { %v2450_v49 = vpop.xlane.xlu1 %2449 }
 0x698   : > { %v2452_v50 = vmul.f32 0.03125, %v2450_v49 }
 0x69a   : > { %v2453_v51 = vsub.f32 %v2445_v47, %v2452_v50  ;;  %v4297_v50 = vld [vmem:[%s5900_s5] ss:$0 sm:$0xff]  ;;  %s5905_s5 = smov 104  }
 0x69c   : > { %v2454_v52 = vmul.f32 %v2453_v51, %v2453_v51 }
 0x69e   : > { %v2455_v53 = vsel %vm1607_vm3, %v2454_v52, 0.0 }
 0x69f   : > { %2456 = vadd.xlane.f32.xlu0 %v2455_v53  ;;  %v4301_v53 = vld [vmem:[%s5901_s1] ss:$0 sm:$0xff]  ;;  %s5908_s1 = sld [smem:[#allocation32_spill]] }
 0x728   : > { %v2457_v57 = vpop.xlane.xlu0 %2456 }
 0x729   : > { %v2458_v58 = vmul.f32 0.03125, %v2457_v57 }
 0x72b   : > { %v2459_v59 = vadd.f32 1e-05, %v2458_v58 }
 0x72d   : > { %4894 = vrsqrt.f32 %v2459_v59 }
 0x73a   : > { %v4895_v60 = vpop.eup %4894 }
 0x73b   : > { %v2461_v62 = vmul.f32 %v4895_v60, %v2453_v51 }
 0x73d   : > { %v2468_v0 = vmul.f32 %v4283_v61, %v2461_v62 }
 0x73f   : > { %v2475_v2 = vadd.f32 %v4284_v63, %v2468_v0  ;;  %v4305_v63 = vld [vmem:[%s5904_s6] ss:$0 sm:$0xff]  ;;  %s5907_s6 = sld [smem:[#allocation29_spill]] }
 0x741   : > { %v2476_v3 = vpack.c.bf16 %v2475_v2, %v2475_v2 }
 0x743   : > { %4566 = vmatmul.mubr.msk.bf16.vlgmr.msra.gmra.mxu0 %vm1607_vm3, %v2476_v3 }
 0x744   : > { %4585 = vmatprep.mubr.msk.bf16.mxu0 %vm5067_vm1, %v5066_v1  ;;  %4582 = vmatpush3.bf16.msra.mxu0 %v4852_v28 }
 0x745   : > { %4583 = vmatprep.subr.bf16.mxu0 %v5066_v1 }
 0x748   : > { %4584 = vmatpush3.bf16.msra.mxu0 %v4854_v30 }
 0x749   : > { %4589 = vmatprep.subr.bf16.mxu0 %v5066_v1 }
 0x803   : > { %v2537_v7 = vpop.f32.mrf.mxu0 }
 0x804   : > { %v2538_v8 = vadd.f32 %v4285_v6, %v2537_v7 }
 0x805   : > { %v4567_v10 = vpop.f32.mrf.mxu0 }
 0x806   : > { %v2543_v11 = vmax.f32 %v2538_v8, 0.0 }
 0x807   : > { %v2540_v12 = vpop.f32.mrf.mxu0 }
 0x808   : > { %v2544_v13 = vpack.c.bf16 %v2543_v11, %v2543_v11 }
 0x809   : > { %v4568_v14 = vpop.f32.mrf.mxu0 }
 0x80a   : > { %4578 = vmatmul.mubr.msk.bf16.vlgmr.msra.gmra.mxu1 %vm2584_vm6, %v2544_v13 }
 0x80b   : > { %4601 = vmatprep.mubr.msk.bf16.mxu1 %vm5067_vm1, %v5066_v1  ;;  %4598 = vmatpush3.bf16.msra.mxu1 %v4853_v29 }
 0x80c   : > { %4599 = vmatprep.subr.bf16.mxu1 %v5066_v1 }
 0x80f   : > { %4600 = vmatpush3.bf16.msra.mxu1 %v4855_v31 }
 0x810   : > { %4611 = vmatprep.subr.bf16.mxu1 %v5066_v1 }
 0x8ca   : > { %v2622_v16 = vpop.f32.mrf.mxu1 }
 0x8cb   : > { %v2623_v17 = vadd.f32 %v4289_v15, %v2622_v16 }
 0x8cc   : > { %v4579_v18 = vpop.f32.mrf.mxu1 }
 0x8cd   : > { %v2628_v19 = vadd.f32 %v2623_v17, %v2475_v2 }
 0x8ce   : > { %v2625_v20 = vpop.f32.mrf.mxu1 }
 0x8cf   : > { %v2631_v21 = vsel %vm1607_vm3, %v2628_v19, 0.0 }
 0x8d0   : > { %2632 = vadd.xlane.f32.xlu0 %v2631_v21  ;;  %v4580_v22 = vpop.f32.mrf.mxu1 }
 0x959   : > { %v2633_v23 = vpop.xlane.xlu0 %2632 }
 0x95a   : > { %v2634_v24 = vmul.f32 0.03125, %v2633_v23 }
 0x95c   : > { %v2635_v25 = vsub.f32 %v2628_v19, %v2634_v24 }
 0x95e   : > { %v2636_v26 = vmul.f32 %v2635_v25, %v2635_v25 }
 0x960   : > { %v2637_v27 = vsel %vm1607_vm3, %v2636_v26, 0.0 }
 0x961   : > { %2638 = vadd.xlane.f32.xlu1 %v2637_v27 }
 0x9ea   : > { %v2639_v32 = vpop.xlane.xlu1 %2638 }
 0x9eb   : > { %v2640_v33 = vmul.f32 0.03125, %v2639_v32 }
 0x9ed   : > { %v2641_v34 = vadd.f32 1e-05, %v2640_v33 }
 0x9ef   : > { %4896 = vrsqrt.f32 %v2641_v34 }
 0x9fc   : > { %v4897_v35 = vpop.eup %4896 }
 0x9fd   : > { %v2643_v37 = vmul.f32 %v4897_v35, %v2635_v25 }
 0x9ff   : > { %v2650_v39 = vmul.f32 %v4295_v36, %v2643_v37 }
 0xa01   : > { %v5553_v40 = vadd.f32 %v4296_v38, %v2650_v39 }
 0xa03   : > { %v2658_v43 = vpack.c.bf16 %v5553_v40, %v5553_v40 }
 0xa05   : > { %4586 = vmatmul.mubr.msk.bf16.vlgmr.msra.gmra.mxu0 %vm1607_vm3, %v2658_v43  ;;  %4602 = vmatmul.mubr.msk.bf16.vlgmr.msra.gmra.mxu1 %vm1607_vm3, %v2658_v43 }
 0xa06   : > { %4590 = vmatpush3.bf16.msra.mxu0 %v4856_v41  ;;  %4593 = vmatprep.mubr.msk.bf16.mxu0 %vm5067_vm1, %v5066_v1 }
 0xa07   : > { %4591 = vmatprep.subr.bf16.mxu0 %v5066_v1  ;;  %4613 = vmatprep.mubr.msk.bf16.mxu1 %vm5067_vm1, %v5066_v1 }
 0xa0a   : > { %4592 = vmatpush3.bf16.msra.mxu0 %v4857_v42 }
 0xa0b   : > { %4605 = vmatprep.subr.bf16.mxu0 %v5066_v1 }
 0xa0d   : > { %4594 = vmatmul.mubr.msk.bf16.vlgmr.msra.gmra.mxu0 %vm1607_vm3, %v2658_v43 }
 0xa0e   : > { %4607 = vmatprep.mubr.msk.bf16.mxu0 %vm5067_vm1, %v5066_v1 }
 0xac5   : > { %v2719_v44 = vpop.f32.mrf.mxu0  ;;  %v2845_v45 = vpop.f32.mrf.mxu1 }
 0xac6   : > { %v2720_v55 = vadd.f32 %v4297_v50, %v2719_v44  ;;  %v5584_v5 = vadd.f32 %v4305_v63, %v2845_v45 }
 0xac7   : > { %v4587_v46 = vpop.f32.mrf.mxu0  ;;  %v4603_v47 = vpop.f32.mrf.mxu1 }
 0xac8   : > { %v2851_v59 = vmul.f32 0.35355338, %v2720_v55  ;;  %v2894_v12 = vpack.c.bf16 %v5584_v5, %v5584_v5 }
 0xac9   : > { %v2722_v48 = vpop.f32.mrf.mxu0  ;;  %v2848_v49 = vpop.f32.mrf.mxu1 }
 0xaca   : > { %v2866_v62 = vpack.c.bf16 %v2851_v59, %v2851_v59  ;;  %v3134_v17 = vsel %vm2060_vm5, %v2894_v12, 0 }
 0xacb   : > { %v4588_v51 = vpop.f32.mrf.mxu0  ;;  %v4604_v52 = vpop.f32.mrf.mxu1 }
 0xacd   : > { %v2782_v54 = vpop.f32.mrf.mxu0 }
 0xace   : > { %v2783_v9 = vadd.f32 %v4301_v53, %v2782_v54 }
 0xacf   : > { %v4595_v56 = vpop.f32.mrf.mxu0 }
 0xad0   : > { %2874 = vrot.lane.b32.xlu1 %v2783_v9, %s5902_s23  ;;  %2871 = vrot.lane.b32.xlu0 %v2783_v9, %s5903_s3  ;;  %v2880_v57 = vpack.c.bf16 %v2783_v9, %v2783_v9 }
 0xad1   : > { %v2785_v58 = vpop.f32.mrf.mxu0 }
 0xad2   : > { %v2902_v60 = vsel %vm1824_vm4, %v2880_v57, 0 }
 0xad3   : > { %v4596_v61 = vpop.f32.mrf.mxu0  ;;  %4606 = vmatpush3.bf16.xpose.msra.mxu0 %v2902_v60 }
 0xad4   : > { %2857 = vrot.lane.b32.xlu1 %v2851_v59, %s5903_s3  ;;  %2877 = vrot.lane.b32.xlu0 %v2783_v9, %s5905_s5 }
 0xad5   : > { %4617 = vmatprep.subr.bf16.mxu0 %v5066_v1 }
 0xad8   : > { %2860 = vrot.lane.b32.xlu1 %v2851_v59, %s5902_s23  ;;  %2863 = vrot.lane.b32.xlu0 %v2851_v59, %s5905_s5 }
 0xada   : > { %4608 = vmatmul.mubr.msk.bf16.vlgmr.msra.gmra.mxu0 %vm1824_vm4, %v2866_v62 }
 0xadb   : > { %4619 = vmatprep.mubr.msk.bf16.mxu0 %vm5067_vm1, %v5066_v1 }
 0xb42   : > { %v2875_v0 = vpop.permute.xlu1 %2874  ;;  %v2872_v2 = vpop.permute.xlu0 %2871 }
 0xb43   : > { %v2882_v3 = vpack.c.bf16 %v2875_v0, %v2875_v0  ;;  %v2881_v4 = vpack.c.bf16 %v2872_v2, %v2872_v2 }
 0xb45   : > { %v2994_v6 = vsel %vm1824_vm4, %v2882_v3, 0  ;;  %v2948_v7 = vsel %vm1824_vm4, %v2881_v4, 0 }
 0xb46   : > { %v2858_v8 = vpop.permute.xlu1 %2857  ;;  %4612 = vmatpush3.bf16.xpose.msra.mxu1 %v2948_v7  ;;  %v2878_v10 = vpop.permute.xlu0 %2877  ;;  %4618 = vmatpush3.bf16.xpose.msra.mxu0 %v2994_v6 }
 0xb47   : > { %4623 = vmatprep.subr.bf16.mxu1 %v5066_v1  ;;  %4629 = vmatprep.subr.bf16.mxu0 %v5066_v1  ;;  %v2883_v11 = vpack.c.bf16 %v2878_v10, %v2878_v10  ;;  %v2867_v14 = vpack.c.bf16 %v2858_v8, %v2858_v8 }
 0xb49   : > { %v3040_v16 = vsel %vm1824_vm4, %v2883_v11, 0 }
 0xb4a   : > { %v2861_v13 = vpop.permute.xlu1 %2860  ;;  %v2864_v18 = vpop.permute.xlu0 %2863 }
 0xb4b   : > { %v2868_v15 = vpack.c.bf16 %v2861_v13, %v2861_v13  ;;  %v2869_v19 = vpack.c.bf16 %v2864_v18, %v2864_v18 }
 0xb4d   : > { %4614 = vmatmul.mubr.msk.bf16.vlgmr.msra.gmra.mxu1 %vm1824_vm4, %v2867_v14  ;;  %4620 = vmatmul.mubr.msk.bf16.vlgmr.msra.gmra.mxu0 %vm1824_vm4, %v2868_v15 }
 0xb4e   : > { %4624 = vmatpush3.bf16.xpose.msra.mxu1 %v3040_v16  ;;  %4630 = vmatpush3.bf16.msra.mxu0 %v3134_v17 }
 0xb4f   : > { %4625 = vmatprep.mubr.msk.bf16.mxu1 %vm5067_vm1, %v5066_v1  ;;  %4631 = vmatprep.mubr.msk.bf16.mxu0 %vm5067_vm1, %v5066_v1 }
 0xb50   : > { %4641 = vmatprep.subr.bf16.mxu0 %v5066_v1  ;;  %4635 = vmatprep.subr.bf16.mxu1 %v5066_v1 }
 0xb55   : > { %4626 = vmatmul.mubr.msk.bf16.vlgmr.msra.gmra.mxu1 %vm1824_vm4, %v2869_v19 }
 0xb56   : > { %4637 = vmatprep.mubr.msk.bf16.mxu1 %vm5067_vm1, %v5066_v1 }
 0xb9a   : > { %v2938_v20 = vpop.f32.mrf.mxu0 }
 0xb9b   : > { %v3082_v21 = vsel %vm1824_vm4, %v2938_v20, -inf }
 0xb9c   : > { %3083 = vmax.xlane.f32.xlu1 %v3082_v21  ;;  %v4609_v22 = vpop.f32.mrf.mxu0 }
 0xb9e   : > { %v2941_v23 = vpop.f32.mrf.mxu0 }
 0xba0   : > { %v4610_v24 = vpop.f32.mrf.mxu0 }
 0xc0d   : > { %v2984_v25 = vpop.f32.mrf.mxu1  ;;  %v3030_v26 = vpop.f32.mrf.mxu0 }
 0xc0e   : > { %v3085_v27 = vsel %vm1824_vm4, %v2984_v25, -inf  ;;  %v3088_v32 = vsel %vm1824_vm4, %v3030_v26, -inf }
 0xc0f   : > { %v4621_v28 = vpop.f32.mrf.mxu0  ;;  %3086 = vmax.xlane.f32.xlu0 %v3085_v27  ;;  %v4615_v29 = vpop.f32.mrf.mxu1 }
 0xc11   : > { %v2987_v30 = vpop.f32.mrf.mxu1  ;;  %v3033_v31 = vpop.f32.mrf.mxu0 }
 0xc13   : > { %v4622_v33 = vpop.f32.mrf.mxu0  ;;  %3089 = vmax.xlane.f32.xlu0 %v3088_v32  ;;  %v4616_v34 = vpop.f32.mrf.mxu1 }
 0xc15   : > { %v3076_v35 = vpop.f32.mrf.mxu1 }
 0xc16   : > { %v3091_v36 = vsel %vm1824_vm4, %v3076_v35, -inf }
 0xc17   : > { %3092 = vmax.xlane.f32.xlu1 %v3091_v36  ;;  %v4627_v37 = vpop.f32.mrf.mxu1 }
 0xc19   : > { %v3079_v38 = vpop.f32.mrf.mxu1 }
 0xc1b   : > { %v4628_v39 = vpop.f32.mrf.mxu1 }
 0xc25   : > { %v3084_v41 = vpop.xlane.xlu1 %3083 }
 0xc26   : > { %v3094_v43 = vsub.f32 %v2938_v20, %v3084_v41 }
 0xc28   : > { %v3098_v42 = vmul.f32 1.442695, %v3094_v43 }
 0xc2a   : > { %4898 = vpow2.f32 %v3098_v42 }
 0xc37   : > { %v4899_v44 = vpop.eup %4898 }
 0xc38   : > { %v3106_v45 = vsel %vm1824_vm4, %v4899_v44, 0.0 }
 0xc39   : > { %3107 = vadd.xlane.f32.xlu0 %v3106_v45 }
 0xc98   : > { %v3087_v46 = vpop.xlane.xlu0 %3086 }
 0xc99   : > { %v3095_v47 = vsub.f32 %v2984_v25, %v3087_v46 }
 0xc9b   : > { %v3100_v48 = vmul.f32 1.442695, %v3095_v47 }
 0xc9c   : > { %v3090_v49 = vpop.xlane.xlu0 %3089 }
 0xc9d   : > { %4900 = vpow2.f32 %v3100_v48  ;;  %v3096_v50 = vsub.f32 %v3030_v26, %v3090_v49 }
 0xc9f   : > { %v3102_v51 = vmul.f32 1.442695, %v3096_v50 }
 0xca0   : > { %v3093_v56 = vpop.xlane.xlu1 %3092 }
 0xca1   : > { %4902 = vpow2.f32 %v3102_v51  ;;  %v3097_v57 = vsub.f32 %v3076_v35, %v3093_v56 }
 0xca3   : > { %v3104_v58 = vmul.f32 1.442695, %v3097_v57 }
 0xcaa   : > { %v4901_v52 = vpop.eup %4900 }
 0xcab   : > { %v3109_v53 = vsel %vm1824_vm4, %v4901_v52, 0.0 }
 0xcac   : > { %3110 = vadd.xlane.f32.xlu1 %v3109_v53 }
 0xcae   : > { %v4903_v54 = vpop.eup %4902 }
 0xcaf   : > { %v3112_v55 = vsel %vm1824_vm4, %v4903_v54, 0.0 }
 0xcb0   : > { %3113 = vadd.xlane.f32.xlu0 %v3112_v55 }
 0xcbd   : > { %2888 = vrot.lane.b32.xlu1 %v5584_v5, %s5902_s23  ;;  %s5909_s23 = sld [smem:[#allocation34_spill]] }
 0xcc2   : > { %v3108_v9 = vpop.xlane.xlu0 %3107 }
 0xcc3   : > { %4904 = vrcp.f32 %v3108_v9 }
 0xcc4   : > { %4906 = vpow2.f32 %v3104_v58 }
 0xcc6   : > { %2885 = vrot.lane.b32.xlu0 %v5584_v5, %s5903_s3  ;;  %s5906_s3 = sld [smem:[#allocation28_spill]] }
 0xccc   : > { %v2852_v14 = vld [vmem:[%s5906_s3] sm:$0xf]  ;;  %v2853_v25 = vld [vmem:[%s5906_s3 + $0x4] sm:$0xf]  ;;  %v2854_v27 = vld [vmem:[%s5906_s3 + $0x8] sm:$0xf] }
 0xccd   : > { %v3322_v17 = vsel %vm2060_vm5, %v2852_v14, 0  ;;  %v3368_v26 = vsel %vm2060_vm5, %v2853_v25, 0  ;;  %v3414_v30 = vsel %vm2060_vm5, %v2854_v27, 0  ;;  %v2855_v34 = vld [vmem:[%s5906_s3 + $0xc] sm:$0xf]  ;;  %s5913_s3 = sld [smem:[#allocation35_spill]] }
 0xcce   : > { %v3460_v37 = vsel %vm2060_vm5, %v2855_v34, 0  ;;  %v4862_v34 = vld [vmem:[%s5909_s23 + $0x8] sm:$0xff]  }
 0xcd0   : > { %v4905_v59 = vpop.eup %4904 }
 0xcd1   : > { %v3122_v60 = vmul.f32 %v4905_v59, %v4899_v44  ;;  %v4907_v62 = vpop.eup %4906 }
 0xcd2   : > { %v3115_v63 = vsel %vm1824_vm4, %v4907_v62, 0.0 }
 0xcd3   : > { %v3126_v61 = vpack.c.bf16 %v3122_v60, %v3122_v60 }
 0xcd5   : > { %4632 = vmatmul.mubr.msk.bf16.vlgmr.msra.gmra.mxu0 %vm1824_vm4, %v3126_v61 }
 0xcd6   : > { %4643 = vmatprep.mubr.msk.bf16.mxu0 %vm5067_vm1, %v5066_v1 }
 0xce1   : > { %3116 = vadd.xlane.f32.xlu1 %v3115_v63 }
 0xcf2   : > { %2891 = vrot.lane.b32.xlu1 %v5584_v5, %s5905_s5  ;;  %s5910_s5 = sld [smem:[#allocation30_spill]] }
 0xd35   : > { %v3111_v0 = vpop.xlane.xlu1 %3110 }
 0xd36   : > { %4908 = vrcp.f32 %v3111_v0 }
 0xd39   : > { %v3114_v2 = vpop.xlane.xlu0 %3113  ;;  %v2889_v3 = vpop.permute.xlu1 %2888 }
 0xd3a   : > { %4910 = vrcp.f32 %v3114_v2  ;;  %v2896_v4 = vpack.c.bf16 %v2889_v3, %v2889_v3 }
 0xd3c   : > { %v3226_v6 = vsel %vm2060_vm5, %v2896_v4, 0 }
 0xd3d   : > { %v2886_v7 = vpop.permute.xlu0 %2885  ;;  %4642 = vmatpush3.bf16.msra.mxu0 %v3226_v6 }
 0xd3e   : > { %v2895_v8 = vpack.c.bf16 %v2886_v7, %v2886_v7  ;;  %4653 = vmatprep.subr.bf16.mxu0 %v5066_v1 }
 0xd40   : > { %v3180_v10 = vsel %vm2060_vm5, %v2895_v8, 0  ;;  %v4321_v8 = vld [vmem:[%s5907_s6] ss:$0 sm:$0xff]  ;;  %s5911_s6 = sld [smem:[#allocation31_spill]] }
 0xd41   : > { %4636 = vmatpush3.bf16.msra.mxu1 %v3180_v10 }
 0xd42   : > { %4647 = vmatprep.subr.bf16.mxu1 %v5066_v1 }
 0xd43   : > { %v4909_v5 = vpop.eup %4908 }
 0xd44   : > { %v3123_v11 = vmul.f32 %v4909_v5, %v4901_v52 }
 0xd46   : > { %v3127_v12 = vpack.c.bf16 %v3123_v11, %v3123_v11 }
 0xd47   : > { %v4911_v13 = vpop.eup %4910 }
 0xd48   : > { %4638 = vmatmul.mubr.msk.bf16.vlgmr.msra.gmra.mxu1 %vm1824_vm4, %v3127_v12  ;;  %v3124_v15 = vmul.f32 %v4911_v13, %v4903_v54 }
 0xd49   : > { %4649 = vmatprep.mubr.msk.bf16.mxu1 %vm5067_vm1, %v5066_v1 }
 0xd4a   : > { %v3128_v16 = vpack.c.bf16 %v3124_v15, %v3124_v15 }
 0xd4c   : > { %4644 = vmatmul.mubr.msk.bf16.vlgmr.msra.gmra.mxu0 %vm1824_vm4, %v3128_v16 }
 0xd4d   : > { %4654 = vmatpush3.bf16.msra.mxu0 %v3322_v17  ;;  %4655 = vmatprep.mubr.msk.bf16.mxu0 %vm5067_vm1, %v5066_v1 }
 0xd4e   : > { %4665 = vmatprep.subr.bf16.mxu0 %v5066_v1 }
 0xd6a   : > { %v3117_v18 = vpop.xlane.xlu1 %3116 }
 0xd6b   : > { %4912 = vrcp.f32 %v3117_v18 }
 0xd6e   : > { %v2892_v19 = vpop.permute.xlu1 %2891 }
 0xd6f   : > { %v2897_v20 = vpack.c.bf16 %v2892_v19, %v2892_v19 }
 0xd71   : > { %v3272_v21 = vsel %vm2060_vm5, %v2897_v20, 0 }
 0xd72   : > { %4648 = vmatpush3.bf16.msra.mxu1 %v3272_v21  ;;  %v4858_v21 = vld [vmem:[%s5908_s1 + $0x8] sm:$0xff]  }
 0xd73   : > { %4659 = vmatprep.subr.bf16.mxu1 %v5066_v1 }
 0xd78   : > { %v4913_v22 = vpop.eup %4912 }
 0xd79   : > { %v3125_v23 = vmul.f32 %v4913_v22, %v4907_v62  ;;  %v4859_v22 = vld [vmem:[%s5908_s1] sm:$0xff]   ;;  %s5912_s1 = sld [smem:[#allocation33_spill]] }
 0xd7b   : > { %v3129_v24 = vpack.c.bf16 %v3125_v23, %v3125_v23  ;;  %v4861_v23 = vld [vmem:[%s5909_s23 + $0x10] sm:$0xff]  }
 0xd7d   : > { %4650 = vmatmul.mubr.msk.bf16.vlgmr.msra.gmra.mxu1 %vm1824_vm4, %v3129_v24 }
 0xd7e   : > { %4661 = vmatprep.mubr.msk.bf16.mxu1 %vm5067_vm1, %v5066_v1  ;;  %4660 = vmatpush3.bf16.msra.mxu1 %v3368_v26 }
 0xd7f   : > { %4671 = vmatprep.subr.bf16.mxu1 %v5066_v1 }
 0xd95   : > { %v3170_v28 = vpop.f32.mrf.mxu0 }
 0xd96   : > { %v3314_v29 = vpack.c.bf16 %v3170_v28, %v3170_v28  ;;  %v4322_v28 = vld [vmem:[%s5910_s5] ss:$0 sm:$0xff]  ;;  %s5914_s5 = sld [smem:[#allocation38_spill]] }
 0xd97   : > { %v4633_v31 = vpop.f32.mrf.mxu0 }
 0xd98   : > { %4656 = vmatmul.mubr.msk.bf16.vlgmr.msra.gmra.mxu0 %vm1824_vm4, %v3314_v29 }
 0xd99   : > { %v3173_v32 = vpop.f32.mrf.mxu0  ;;  %4666 = vmatpush3.bf16.msra.mxu0 %v3414_v30  ;;  %4667 = vmatprep.mubr.msk.bf16.mxu0 %vm5067_vm1, %v5066_v1  ;;  %v4323_v30 = vld [vmem:[%s5911_s6] ss:$0 sm:$0xff]  ;;  %s5916_s6 = sld [smem:[#allocation37_spill]] }
 0xd9a   : > { %4677 = vmatprep.subr.bf16.mxu0 %v5066_v1 }
 0xd9b   : > { %v4634_v33 = vpop.f32.mrf.mxu0 }
 0xe08   : > { %v3216_v35 = vpop.f32.mrf.mxu1 }
 0xe09   : > { %v3315_v36 = vpack.c.bf16 %v3216_v35, %v3216_v35  ;;  %v4863_v35 = vld [vmem:[%s5909_s23] sm:$0xff]  }
 0xe0a   : > { %v4639_v38 = vpop.f32.mrf.mxu1 }
 0xe0b   : > { %4662 = vmatmul.mubr.msk.bf16.vlgmr.msra.gmra.mxu1 %vm1824_vm4, %v3315_v36  ;;  %v4324_v36 = vld [vmem:[%s5912_s1] ss:$0 sm:$0xff]  ;;  %s5915_s1 = sld [smem:[#allocation36_spill]] }
 0xe0c   : > { %v3219_v39 = vpop.f32.mrf.mxu1  ;;  %v3262_v41 = vpop.f32.mrf.mxu0  ;;  %4672 = vmatpush3.bf16.msra.mxu1 %v3460_v37  ;;  %4673 = vmatprep.mubr.msk.bf16.mxu1 %vm5067_vm1, %v5066_v1 }
 0xe0d   : > { %v3316_v43 = vpack.c.bf16 %v3262_v41, %v3262_v41  ;;  %4685 = vmatprep.subr.bf16.mxu1 %v5066_v1 }
 0xe0e   : > { %v4640_v42 = vpop.f32.mrf.mxu1  ;;  %v4645_v44 = vpop.f32.mrf.mxu0 }
 0xe0f   : > { %4668 = vmatmul.mubr.msk.bf16.vlgmr.msra.gmra.mxu0 %vm1824_vm4, %v3316_v43 }
 0xe10   : > { %v3265_v45 = vpop.f32.mrf.mxu0  ;;  %4681 = vmatprep.mubr.msk.bf16.mxu0 %vm5067_vm1, %v5066_v1  ;;  %4678 = vmatpush3.bf16.msra.mxu0 %v4858_v21 }
 0xe11   : > { %4679 = vmatprep.subr.bf16.mxu0 %v5066_v1  ;;  %v4328_v45 = vld [vmem:[%s5913_s3] ss:$0 sm:$0xff]  ;;  %s5917_s3 = sld [smem:[#allocation39_spill]] }
 0xe12   : > { %v4646_v46 = vpop.f32.mrf.mxu0 }
 0xe14   : > { %4680 = vmatpush3.bf16.msra.mxu0 %v4859_v22 }
 0xe15   : > { %4697 = vmatprep.subr.bf16.mxu0 %v5066_v1 }
 0xe3d   : > { %v3308_v47 = vpop.f32.mrf.mxu1 }
 0xe3e   : > { %v3317_v48 = vpack.c.bf16 %v3308_v47, %v3308_v47 }
 0xe3f   : > { %v4651_v49 = vpop.f32.mrf.mxu1 }
 0xe40   : > { %4674 = vmatmul.mubr.msk.bf16.vlgmr.msra.gmra.mxu1 %vm1824_vm4, %v3317_v48 }
 0xe41   : > { %v3311_v50 = vpop.f32.mrf.mxu1  ;;  %4693 = vmatprep.mubr.msk.bf16.mxu1 %vm5067_vm1, %v5066_v1 }
 0xe43   : > { %v4652_v51 = vpop.f32.mrf.mxu1 }
 0xe58   : > { %v3358_v52 = vpop.f32.mrf.mxu0 }
 0xe59   : > { %v3502_v0 = vsel %vm1607_vm3, %v3358_v52, 0.0 }
 0xe5a   : > { %v4657_v53 = vpop.f32.mrf.mxu0 }
 0xe5c   : > { %v3361_v54 = vpop.f32.mrf.mxu0 }
 0xe5e   : > { %v4658_v55 = vpop.f32.mrf.mxu0 }
 0xecb   : > { %v3404_v9 = vpop.f32.mrf.mxu1 }
 0xecc   : > { %v3503_v63 = vsel %vm1607_vm3, %v3404_v9, 0.0 }
 0xecd   : > { %v4663_v56 = vpop.f32.mrf.mxu1  ;;  %v3504_v3 = vadd.f32 %v3503_v63, %v3502_v0  ;;  %v4334_v63 = vld [vmem:[%s5915_s1] ss:$0 sm:$0xff] }
 0xecf   : > { %v3407_v57 = vpop.f32.mrf.mxu1  ;;  %v3450_v58 = vpop.f32.mrf.mxu0 }
 0xed0   : > { %v3505_v2 = vsel %vm1607_vm3, %v3450_v58, 0.0  ;;  %v4864_v57 = vld [vmem:[%s5914_s5 + $0x8] sm:$0xff]   ;;  %v4865_v58 = vld [vmem:[%s5914_s5] sm:$0xff]   ;;  %s5701_s5 = sand.u32 1, %s5006_s16  }
 0xed1   : > { %v4664_v59 = vpop.f32.mrf.mxu1  ;;  %v4669_v60 = vpop.f32.mrf.mxu0  ;;  %v3506_v4 = vadd.f32 %v3505_v2, %v3504_v3  ;;  %v4335_v2 = vld [vmem:[%s5916_s6] ss:$0 sm:$0xff]  ;;  %s5832_s1 = scalar_lea.vmem [#allocation4], %s5701_s5  ;;  %s5918_s6 = sld [smem:[#allocation46_spill]] }
 0xed2   : > { %s5927_s9 = scalar_lea.vmem [#allocation4], %s5701_s5  ;;  %s4092_s13 = scalar_lea.sflag [#allocation5], %s5701_s5 }
 0xed3   : > { %v3453_v61 = vpop.f32.mrf.mxu0  ;;  %s4117_s11 = sshll.u32 %s5927_s9, 4  ;;  %s4118_s11 = int_to_ptr.vmem [resolvable:$true] %s4117_s11 }
 0xed5   : > { %v4670_v62 = vpop.f32.mrf.mxu0 }
 0xf00   : > { %v3496_v6 = vpop.f32.mrf.mxu1 }
 0xf01   : > { %v3507_v7 = vsel %vm1607_vm3, %v3496_v6, 0.0 }
 0xf02   : > { %v3508_v10 = vadd.f32 %v3507_v7, %v3506_v4  ;;  %v4675_v5 = vpop.f32.mrf.mxu1 }
 0xf04   : > { %v3516_v11 = vadd.f32 %v4321_v8, %v3508_v10  ;;  %v3499_v12 = vpop.f32.mrf.mxu1 }
 0xf06   : > { %v4676_v13 = vpop.f32.mrf.mxu1  ;;  %v3517_v14 = vadd.f32 %v3516_v11, %v5553_v40  ;;  %v4860_v40 = vld [vmem:[%s5909_s23 + $0x18] sm:$0xff]  }
 0xf07   : > { %4686 = vmatpush3.bf16.msra.mxu1 %v4860_v40 }
 0xf08   : > { %v3520_v15 = vsel %vm1607_vm3, %v3517_v14, 0.0  ;;  %4687 = vmatprep.subr.bf16.mxu1 %v5066_v1 }
 0xf09   : > { %3521 = vadd.xlane.f32.xlu0 %v3520_v15 }
 0xf0b   : > { %4688 = vmatpush3.bf16.msra.mxu1 %v4861_v23 }
 0xf0c   : > { %4689 = vmatprep.subr.bf16.mxu1 %v5066_v1 }
 0xf0f   : > { %4690 = vmatpush3.bf16.msra.mxu1 %v4862_v34 }
 0xf10   : > { %4691 = vmatprep.subr.bf16.mxu1 %v5066_v1 }
 0xf13   : > { %4692 = vmatpush3.bf16.msra.mxu1 %v4863_v35 }
 0xf14   : > { %4717 = vmatprep.subr.bf16.mxu1 %v5066_v1 }
 0xf92   : > { %v3522_v16 = vpop.xlane.xlu0 %3521 }
 0xf93   : > { %v3523_v17 = vmul.f32 0.03125, %v3522_v16 }
 0xf95   : > { %v3524_v18 = vsub.f32 %v3517_v14, %v3523_v17  ;;  %v3742_v14 = vld [vmem:[%s5917_s3] sm:$0x1]  ;;  %s5920_s3 = sld [smem:[#allocation40_spill]] }
 0xf97   : > { %v3525_v19 = vmul.f32 %v3524_v18, %v3524_v18 }
 0xf99   : > { %v3526_v20 = vsel %vm1607_vm3, %v3525_v19, 0.0 }
 0xf9a   : > { %3527 = vadd.xlane.f32.xlu1 %v3526_v20 }
0x1023   : > { %v3528_v24 = vpop.xlane.xlu1 %3527 }
0x1024   : > { %v3529_v25 = vmul.f32 0.03125, %v3528_v24 }
0x1026   : > { %v3530_v26 = vadd.f32 1e-05, %v3529_v25 }
0x1028   : > { %4914 = vrsqrt.f32 %v3530_v26 }
0x1035   : > { %v4915_v27 = vpop.eup %4914 }
0x1036   : > { %v3532_v29 = vmul.f32 %v4915_v27, %v3524_v18 }
0x1038   : > { %v3539_v31 = vmul.f32 %v4322_v28, %v3532_v29  ;;  %v3798_v29 = vld [vmem:[%s5918_s6] sm:$0x1]  ;;  %s5921_s6 = sld [smem:[#allocation48_spill]] }
0x103a   : > { %v3546_v32 = vadd.f32 %v4323_v30, %v3539_v31  ;;  %v3799_v31 = vld [vmem:[%s5919_s8] sm:$0x1]  ;;  %s5922_s8 = sld [smem:[#allocation49_spill]] }
0x103c   : > { %v3547_v33 = vpack.c.bf16 %v3546_v32, %v3546_v32 }
0x103e   : > { %4682 = vmatmul.mubr.msk.bf16.vlgmr.msra.gmra.mxu0 %vm1607_vm3, %v3547_v33 }
0x103f   : > { %4701 = vmatprep.mubr.msk.bf16.mxu0 %vm5067_vm1, %v5066_v1  ;;  %4698 = vmatpush3.bf16.msra.mxu0 %v4864_v57 }
0x1040   : > { %4699 = vmatprep.subr.bf16.mxu0 %v5066_v1 }
0x1043   : > { %4700 = vmatpush3.bf16.msra.mxu0 %v4865_v58 }
0x1044   : > { %4705 = vmatprep.subr.bf16.mxu0 %v5066_v1 }
0x10fe   : > { %v3608_v37 = vpop.f32.mrf.mxu0 }
0x10ff   : > { %v3609_v38 = vadd.f32 %v4324_v36, %v3608_v37 }
0x1100   : > { %v4683_v39 = vpop.f32.mrf.mxu0 }
0x1101   : > { %v3614_v41 = vmax.f32 %v3609_v38, 0.0 }
0x1102   : > { %v3611_v43 = vpop.f32.mrf.mxu0 }
0x1103   : > { %v3615_v42 = vpack.c.bf16 %v3614_v41, %v3614_v41  ;;  %v4866_v41 = vld [vmem:[%s5920_s3 + $0x18] sm:$0xff]   ;;  %v4867_v43 = vld [vmem:[%s5920_s3 + $0x10] sm:$0xff]  }
0x1104   : > { %v4684_v44 = vpop.f32.mrf.mxu0 }
0x1105   : > { %4694 = vmatmul.mubr.msk.bf16.vlgmr.msra.gmra.mxu1 %vm2584_vm6, %v3615_v42  ;;  %v4868_v42 = vld [vmem:[%s5920_s3 + $0x8] sm:$0xff]   ;;  %v4869_v44 = vld [vmem:[%s5920_s3] sm:$0xff]   ;;  %s5924_s3 = sld [smem:[#allocation42_spill]] }
0x1106   : > { %4725 = vmatprep.mubr.msk.bf16.mxu1 %vm5067_vm1, %v5066_v1 }
0x11c5   : > { %v3692_v46 = vpop.f32.mrf.mxu1 }
0x11c6   : > { %v3693_v47 = vadd.f32 %v4328_v45, %v3692_v46 }
0x11c7   : > { %v4695_v48 = vpop.f32.mrf.mxu1 }
0x11c8   : > { %v3698_v49 = vadd.f32 %v3693_v47, %v3546_v32 }
0x11c9   : > { %v3695_v50 = vpop.f32.mrf.mxu1 }
0x11ca   : > { %v3701_v51 = vsel %vm1607_vm3, %v3698_v49, 0.0 }
0x11cb   : > { %3702 = vadd.xlane.f32.xlu0 %v3701_v51  ;;  %v4696_v52 = vpop.f32.mrf.mxu1  ;;  %v3818_v51 = vld [vmem:[%s5922_s8] sm:$0x1]  ;;  %s4354_s8 = sshll.u32 %s5354_s0, 4 }
0x1254   : > { %v3703_v53 = vpop.xlane.xlu0 %3702 }
0x1255   : > { %v3704_v54 = vmul.f32 0.03125, %v3703_v53 }
0x1257   : > { %v3705_v55 = vsub.f32 %v3698_v49, %v3704_v54  ;;  %v3817_v49 = vld [vmem:[%s5921_s6] sm:$0x1]  ;;  %s5925_s6 = sld [smem:[#allocation44_spill]] }
0x1259   : > { %v3706_v9 = vmul.f32 %v3705_v55, %v3705_v55 }
0x125b   : > { %v3707_v56 = vsel %vm1607_vm3, %v3706_v9, 0.0 }
0x125c   : > { %3708 = vadd.xlane.f32.xlu0 %v3707_v56 }
0x12e5   : > { %v3709_v59 = vpop.xlane.xlu0 %3708 }
0x12e6   : > { %v3710_v60 = vmul.f32 0.03125, %v3709_v59 }
0x12e8   : > { %v3711_v61 = vadd.f32 1e-05, %v3710_v60 }
0x12ea   : > { %4916 = vrsqrt.f32 %v3711_v61 }
0x12f7   : > { %v4917_v62 = vpop.eup %4916 }
0x12f8   : > { %v3713_v0 = vmul.f32 %v4917_v62, %v3705_v55 }
0x12fa   : > { %v3720_v3 = vmul.f32 %v4334_v63, %v3713_v0 }
0x12fc   : > { %v3727_v4 = vadd.f32 %v4335_v2, %v3720_v3 }
0x12fe   : > { %v3728_v6 = vsel %vm1607_vm3, %v3727_v4, 0.0  ;;  %v4870_v4 = vld [vmem:[%s5924_s3 + $0x18] sm:$0xff]  }
0x12ff   : > { %v3729_v7 = vrot.slane %v3728_v6, 4  ;;  %4718 = vmatpush3.bf16.msra.mxu1 %v4870_v4 }
0x1300   : > { %4719 = vmatprep.subr.bf16.mxu1 %v5066_v1 }
0x1301   : > { %v3730_v8 = vadd.f32 %v3729_v7, %v3728_v6  ;;  %v4871_v6 = vld [vmem:[%s5924_s3 + $0x10] sm:$0xff]   ;;  %v4872_v7 = vld [vmem:[%s5924_s3 + $0x8] sm:$0xff]  }
0x1303   : > { %v3731_v10 = vrot.slane %v3730_v8, 2  ;;  %4720 = vmatpush3.bf16.msra.mxu1 %v4871_v6 }
0x1304   : > { %4721 = vmatprep.subr.bf16.mxu1 %v5066_v1 }
0x1305   : > { %v3732_v5 = vadd.f32 %v3731_v10, %v3730_v8  ;;  %v4873_v8 = vld [vmem:[%s5924_s3] sm:$0xff]   ;;  %v4874_v10 = vld [vmem:[%s5925_s6 + $0x18] sm:$0xff]   ;;  %s4115_s3 = scalar_lea.hbm %s5331_s12, %s4354_s8 }
0x1307   : > { %v3733_v11 = vrot.slane %v3732_v5, 1  ;;  %4722 = vmatpush3.bf16.msra.mxu1 %v4872_v7 }
0x1308   : > { %4723 = vmatprep.subr.bf16.mxu1 %v5066_v1 }
0x1309   : > { %v3734_v12 = vadd.f32 %v3733_v11, %v3732_v5  ;;  %v4875_v5 = vld [vmem:[%s5925_s6 + $0x10] sm:$0xff]  }
0x130b   : > { %v3737_v13 = vpack.c.bf16 %v3734_v12, %v3734_v12  ;;  %3736 = vst.msk [vmem:[%s5832_s1] sm:$0x1] %vm3735_vm7, %v3734_v12  ;;  %s5923_s1 = sld [smem:[#allocation41_spill]]  ;;  %4724 = vmatpush3.bf16.msra.mxu1 %v4873_v8 }
0x130d   : > { %4702 = vmatmul.mubr.msk.bf16.vlgmr.msra.gmra.mxu0 %vm1607_vm3, %v3737_v13 }
0x130e   : > { %4713 = vmatprep.mubr.msk.bf16.mxu0 %vm5067_vm1, %v5066_v1  ;;  %4706 = vmatpush3.bf16.msra.mxu0 %v4866_v41 }
0x130f   : > { %4707 = vmatprep.subr.bf16.mxu0 %v5066_v1 }
0x1311   : > { %v3844_v9 = vld [vmem:[%s5923_s1] sm:$0x1]  ;;  %s5926_s1 = sld [smem:[#allocation43_spill]] }
0x1312   : > { %4708 = vmatpush3.bf16.msra.mxu0 %v4867_v43 }
0x1313   : > { %4709 = vmatprep.subr.bf16.mxu0 %v5066_v1 }
0x1316   : > { %4710 = vmatpush3.bf16.msra.mxu0 %v4868_v42 }
0x1317   : > { %4711 = vmatprep.subr.bf16.mxu0 %v5066_v1 }
0x131a   : > { %4712 = vmatpush3.bf16.msra.mxu0 %v4869_v44 }
0x131b   : > { %4729 = vmatprep.subr.bf16.mxu0 %v5066_v1 }
0x13cd   : > { %v3792_v15 = vpop.f32.mrf.mxu0 }
0x13ce   : > { %v3793_v16 = vadd.f32 %v3792_v15, %v3742_v14  ;;  %v3912_v15 = vld [vmem:[%s5316_s30] sm:$0x1] }
0x13cf   : > { %v4703_v17 = vpop.f32.mrf.mxu0 }
0x13d0   : > { %v3801_v18 = vsel %vm3800_vm8, %v3793_v16, 0.0  ;;  %v3913_v17 = vld [vmem:[%s5321_s27] sm:$0x1] }
0x13d1   : > { %3802 = vadd.xlane.f32.xlu1 %v3801_v18  ;;  %v3795_v19 = vpop.f32.mrf.mxu0 }
0x13d3   : > { %v4704_v20 = vpop.f32.mrf.mxu0 }
0x145a   : > { %v3803_v21 = vpop.xlane.xlu1 %3802 }
0x145b   : > { %v3805_v22 = vmul.f32 0.015625, %v3803_v21 }
0x145d   : > { %v3806_v40 = vsub.f32 %v3793_v16, %v3805_v22  ;;  %v4876_v22 = vld [vmem:[%s5925_s6 + $0x8] sm:$0xff]  }
0x145f   : > { %v3807_v23 = vmul.f32 %v3806_v40, %v3806_v40 }
0x1461   : > { %v3808_v24 = vsel %vm3800_vm8, %v3807_v23, 0.0  ;;  %v3939_v23 = vld [vmem:[%s5926_s1] sm:$0x1]  ;;  %s5071_s1 = smov [#allocation4]  }
0x1462   : > { %3809 = vadd.xlane.f32.xlu0 %v3808_v24  ;;  %s4928_s14 = sshll.u32 %s5071_s1, 4  ;;  %s4929_s14 = int_to_ptr.vmem [resolvable:$false] %s4928_s14 }
0x1463   : > { %s4930_s17 = scalar_lea.vmem %s4929_s14, 32  ;;  %p4931_p0 = scmp.lt.s32.totalorder %s4118_s11, %s4929_s14 }
0x14eb   : > { %v3810_v25 = vpop.xlane.xlu0 %3809 }
0x14ec   : > { %v3811_v26 = vmul.f32 0.015625, %v3810_v25 }
0x14ee   : > { %v3812_v27 = vadd.f32 1e-05, %v3811_v26 }
0x14f0   : > { %4918 = vrsqrt.f32 %v3812_v27 }
0x14fd   : > { %v4919_v28 = vpop.eup %4918 }
0x14fe   : > { %v3814_v30 = vmul.f32 %v4919_v28, %v3806_v40  ;;  %v4877_v40 = vld [vmem:[%s5925_s6] sm:$0xff]   ;;  %s4924_s6 = scalar_lea.vmem %s4118_s11, 16 }
0x14ff   : > { %p4925_p11 = scmp.ne.s32.totalorder %s4118_s11, %s4924_s6  ;;  %p4932_p1 = scmp.lt.s32.totalorder %s4930_s17, %s4924_s6 }
0x1500   : > { %v3815_v32 = vmul.f32 %v3814_v30, %v3798_v29 }
0x1501   : > { %p4926_p12 = pnand %p4925_p11, %p5371_p5  ;;  %p4933_p2 = por %p4932_p1, %p4931_p0 }
0x1502   : > { %v3816_v33 = vadd.f32 %v3815_v32, %v3799_v31 }
0x1503   : > { %p4927_p13 = pneg %p4926_p12 }
0x1504   : > { %v3819_v34 = vsel %vm3800_vm8, %v3816_v33, 0.0 }
0x1505   : > { %3820 = vadd.xlane.f32.xlu1 %v3819_v34  ;;  %p4934_p3 = pnand %p4933_p2, %p4927_p13 }
0x158e   : > { %v3821_v35 = vpop.xlane.xlu1 %3820 }
0x158f   : > { %v3822_v36 = vmul.f32 0.015625, %v3821_v35 }
0x1591   : > { %v3823_v37 = vsub.f32 %v3816_v33, %v3822_v36 }
0x1593   : > { %v3824_v38 = vmul.f32 %v3823_v37, %v3823_v37 }
0x1595   : > { %v3825_v39 = vsel %vm3800_vm8, %v3824_v38, 0.0 }
0x1596   : > { %3826 = vadd.xlane.f32.xlu0 %v3825_v39 }
0x161f   : > { %v3827_v45 = vpop.xlane.xlu0 %3826 }
0x1620   : > { %v3828_v46 = vmul.f32 0.015625, %v3827_v45 }
0x1622   : > { %v3829_v47 = vadd.f32 1e-05, %v3828_v46 }
0x1624   : > { %4920 = vrsqrt.f32 %v3829_v47 }
0x1631   : > { %v4921_v48 = vpop.eup %4920 }
0x1632   : > { %v3831_v50 = vmul.f32 %v4921_v48, %v3823_v37 }
0x1634   : > { %v3832_v52 = vmul.f32 %v3831_v50, %v3817_v49 }
0x1636   : > { %v3833_v53 = vadd.f32 %v3832_v52, %v3818_v51 }
0x1638   : > { %v3834_v54 = vmax.f32 %v3833_v53, 0.0 }
0x163a   : > { %v3835_v55 = vpack.c.bf16 %v3834_v54, %v3834_v54 }
0x163c   : > { %4714 = vmatmul.mubr.msk.bf16.vlgmr.msra.gmra.mxu0 %vm2584_vm6, %v3835_v55 }
0x163d   : > { %4737 = vmatprep.mubr.msk.bf16.mxu0 %vm5067_vm1, %v5066_v1  ;;  %4730 = vmatpush3.bf16.msra.mxu0 %v4874_v10 }
0x163e   : > { %4731 = vmatprep.subr.bf16.mxu0 %v5066_v1 }
0x1641   : > { %4732 = vmatpush3.bf16.msra.mxu0 %v4875_v5 }
0x1642   : > { %4733 = vmatprep.subr.bf16.mxu0 %v5066_v1 }
0x1645   : > { %4734 = vmatpush3.bf16.msra.mxu0 %v4876_v22 }
0x1646   : > { %4735 = vmatprep.subr.bf16.mxu0 %v5066_v1 }
0x1649   : > { %4736 = vmatpush3.bf16.msra.mxu0 %v4877_v40 }
0x16fc   : > { %v3906_v56 = vpop.f32.mrf.mxu0 }
0x16fd   : > { %v3907_v57 = vadd.f32 %v3906_v56, %v3844_v9 }
0x16fe   : > { %v4715_v58 = vpop.f32.mrf.mxu0 }
0x16ff   : > { %v3914_v59 = vsel %vm3800_vm8, %v3907_v57, 0.0 }
0x1700   : > { %3915 = vadd.xlane.f32.xlu1 %v3914_v59  ;;  %v3909_v60 = vpop.f32.mrf.mxu0 }
0x1702   : > { %v4716_v61 = vpop.f32.mrf.mxu0 }
0x1789   : > { %v3916_v62 = vpop.xlane.xlu1 %3915 }
0x178a   : > { %v3917_v63 = vmul.f32 0.015625, %v3916_v62 }
0x178c   : > { %v3918_v0 = vsub.f32 %v3907_v57, %v3917_v63 }
0x178e   : > { %v3919_v2 = vmul.f32 %v3918_v0, %v3918_v0 }
0x1790   : > { %v3920_v3 = vsel %vm3800_vm8, %v3919_v2, 0.0 }
0x1791   : > { %3921 = vadd.xlane.f32.xlu0 %v3920_v3 }
0x181a   : > { %v3922_v11 = vpop.xlane.xlu0 %3921 }
0x181b   : > { %v3923_v12 = vmul.f32 0.015625, %v3922_v11 }
0x181d   : > { %v3924_v13 = vadd.f32 1e-05, %v3923_v12 }
0x181f   : > { %4922 = vrsqrt.f32 %v3924_v13 }
0x182c   : > { %v4923_v14 = vpop.eup %4922 }
0x182d   : > { %v3926_v16 = vmul.f32 %v4923_v14, %v3918_v0 }
0x182f   : > { %v3927_v18 = vmul.f32 %v3926_v16, %v3912_v15 }
0x1831   : > { %v3928_v19 = vadd.f32 %v3927_v18, %v3913_v17 }
0x1833   : > { %v3929_v20 = vmax.f32 %v3928_v19, 0.0 }
0x1835   : > { %v3930_v21 = vpack.c.bf16 %v3929_v20, %v3929_v20 }
0x1837   : > { %4726 = vmatmul.mubr.msk.bf16.vlgmr.msra.gmra.mxu1 %vm2584_vm6, %v3930_v21 }
0x18f7   : > { %v4001_v24 = vpop.f32.mrf.mxu1 }
0x18f8   : > { %v4002_v25 = vadd.f32 %v4001_v24, %v3939_v23 }
0x18f9   : > { %v4727_v26 = vpop.f32.mrf.mxu1 }
0x18fa   : > { %v4007_v27 = vmax.f32 %v4002_v25, 0.0 }
0x18fb   : > { %v4004_v28 = vpop.f32.mrf.mxu1 }
0x18fc   : > { %v4008_v29 = vpack.c.bf16 %v4007_v27, %v4007_v27 }
0x18fd   : > { %v4728_v30 = vpop.f32.mrf.mxu1 }
0x18fe   : > { %4738 = vmatmul.mubr.msk.bf16.vlgmr.msra.gmra.mxu0 %vm2584_vm6, %v4008_v29 }
0x18ff   : > { %4937 = shalt.err (!%p4934_p3)
}
0x1900   : > { %s4938_s19 = scalar_lea.hbm %s4115_s3, 16  ;;  %s4942_s9 = scalar_lea.hbm %s5331_s12, 32 }
0x1901   : > { %p4939_p4 = scmp.ne.s32.totalorder %s4115_s3, %s4938_s19  ;;  %p4943_p9 = scmp.lt.s32.totalorder %s4115_s3, %s5331_s12 }
0x1902   : > { %p4944_p10 = scmp.lt.s32.totalorder %s4942_s9, %s4938_s19 }
0x1903   : > { %p4940_p7 = pnand %p4939_p4, %p5371_p5 }
0x1904   : > { %p4945_p11 = por %p4944_p10, %p4943_p9 }
0x1905   : > { %p4941_p8 = pneg %p4940_p7 }
0x1907   : > { %p4946_p12 = pnand %p4945_p11, %p4941_p8 }
0x1909   : > { %4949 = shalt.err (!%p4946_p12)
}
0x190a   : > { %s5928_s17 = sld [smem:[#allocation45_spill]]  ;;  %s1484_s14 = scalar_lea.vmem [#allocation2], %s5701_s5  ;;  %vm4085_vm9 = vcmask 57344  }
0x190b   : > { %4742 = dma.vmem_to_hbm [thread:$0]  (%p5371_p5), %s4118_s11, 16, %s4115_s3, %s4092_s13  }
0x190c   : > { %s4104_s6 = sshll.u32 %s1484_s14, 4  ;;  %s5771_s19 = scalar_lea.hbm %s5326_s4, %s4354_s8  ;;  %s5773_s6 = int_to_ptr.vmem [resolvable:$true] %s4104_s6 }
0x190d   : > { %s4088_s1 = scalar_lea.sflag [#allocation3], %s5701_s5  ;;  %s4950_s9 = scalar_lea.vmem %s5773_s6, 16 }
0x190e   : > { %p4951_p13 = scmp.ne.s32.totalorder %s5773_s6, %s4950_s9  ;;  %s5072_s13 = smov [#allocation2]  }
0x190f   : > { %s4954_s11 = sshll.u32 %s5072_s13, 4  ;;  %s4955_s11 = int_to_ptr.vmem [resolvable:$false] %s4954_s11 }
0x1910   : > { %v4017_v1 = vld [vmem:[%s5928_s17] sm:$0x1]  ;;  %p4952_p0 = pnand %p4951_p13, %p5371_p5  ;;  %s4956_s0 = scalar_lea.vmem %s4955_s11, 32 }
0x1911   : > { %p4957_p2 = scmp.lt.s32.totalorder %s5773_s6, %s4955_s11  ;;  %p4958_p3 = scmp.lt.s32.totalorder %s4956_s0, %s4950_s9 }
0x1912   : > { %p4953_p1 = pneg %p4952_p0 }
0x1913   : > { %p4959_p4 = por %p4958_p3, %p4957_p2 }
0x1915   : > { %p4960_p7 = pnand %p4959_p4, %p4953_p1 }
0x19be   : > { %v4079_v31 = vpop.f32.mrf.mxu0 }
0x19bf   : > { %v4080_v32 = vadd.f32 %v4079_v31, %v4017_v1 }
0x19c0   : > { %v4739_v33 = vpop.f32.mrf.mxu0 }
0x19c1   : > { %4086 = vst.msk [vmem:[%s1484_s14] sm:$0x1] %vm4085_vm9, %v4080_v32 }
0x19c2   : > { %v4082_v34 = vpop.f32.mrf.mxu0 }
0x19c3   : > { %4963 = shalt.err (!%p4960_p7)
}
0x19c4   : > { %s4964_s5 = scalar_lea.hbm %s5771_s19, 16  ;;  %s4968_s3 = scalar_lea.hbm %s5326_s4, 32 }
0x19c5   : > { %p4965_p8 = scmp.ne.s32.totalorder %s5771_s19, %s4964_s5  ;;  %p4969_p11 = scmp.lt.s32.totalorder %s5771_s19, %s5326_s4 }
0x19c6   : > { %p4970_p12 = scmp.lt.s32.totalorder %s4968_s3, %s4964_s5 }
0x19c7   : > { %p4966_p9 = pnand %p4965_p8, %p5371_p5 }
0x19c8   : > { %p4971_p13 = por %p4970_p12, %p4969_p11 }
0x19c9   : > { %p4967_p10 = pneg %p4966_p9 }
0x19cb   : > { %p4972_p0 = pnand %p4971_p13, %p4967_p10 }
0x19cd   : > { %4975 = shalt.err (!%p4972_p0)
}
0x19ce   : > { %4741 = dma.vmem_to_hbm [thread:$0]  (%p5371_p5), %s5773_s6, 16, %s5771_s19, %s4088_s1   ;;  %v4740_v35 = vpop.f32.mrf.mxu0 }
0x19cf PF: > { %p4752_p1 = scmp.ge.s32.totalorder %s5014_s22, 2  ;;  %s4129_s8 = sand.u32 1, %s5002_s15  }
0x19d0   : > { %s4130_s17 = scalar_lea.sflag [#allocation3], %s4129_s8 }
0x19d1   : > { %p4746_p2 = pnand %p4752_p1, %p5375_p6 }
0x19d3   : > { %p4747_p3 = pneg %p4746_p2 }
0x19d5   : > { %4993 = dma.done.wait (%p4747_p3), %s4130_s17, 16  }
0x19d6   : > { %4995 = vsyncadd (%p4747_p3), %s4130_s17, 4294967280  ;;  %s4138_s14 = scalar_lea.sflag [#allocation5], %s4129_s8 }
0x19d7   : > { %4997 = dma.done.wait (%p4747_p3), %s4138_s14, 16  }
0x19d8   : > { %4999 = vsyncadd (%p4747_p3), %s4138_s14, 4294967280  ;;  %p115_p5 = scmp.ge.s32.totalorder %s5358_s26, 4   ;;  %s5929_s15 = smov %s5006_s16 }
0x19d9   : > { %s5930_s16 = smov %s5010_s18  ;;  %s5931_s18 = smov %s5369_s2 }
0x19da   : > { %s5932_s22 = smov %s5358_s26  ;;  %117 = sbr.rel (!%p115_p5) target bundleno = 99 (0x63), region = 318 }
0x19df   :  { %4142 = vsyncpa [#allocation3], 1 }
0x19e0   :  { %4144 = vsyncpa [#allocation3 + $0x1], 1 }
0x19e1   :  { %4145 = vsyncpa [#allocation5], 1 }
0x19e2   :  { %4147 = vsyncpa [#allocation5 + $0x1], 1 }

</bundles_post_ra>
